<compile_context>
chip_gen: v5e
topology: v5e:2x2
jax: 0.10.0
libtpu: 0.0.40
codegen_flags: <defaults>
</compile_context>

<pallas_src>
import math

import jax
import jax.numpy as jnp
from jax import lax
from jax.experimental import pallas as pl
from jax.experimental.pallas import tpu as pltpu

STAGE_NUM = 3


def emau_kernel(x_ref, w1_ref, b1_ref, mu0_ref, w2_ref, b2_ref,
                out_ref, mu_out_ref):
    # Blocks: x (Bt, C, N); w1/w2 (C, C); b1/b2 (C, 1); mu0 (K, C).
    w1 = w1_ref[...].astype(jnp.bfloat16)
    w2 = w2_ref[...].astype(jnp.bfloat16)
    b1 = b1_ref[...]
    b2 = b2_ref[...]
    mu_init = mu0_ref[...]                        # (K, C) f32

    bt = x_ref.shape[0]
    # Bt is a small static constant -> fully unrolled with static indices.
    for b in range(bt):
        idn = x_ref[b]                            # (C, N) f32 (also the residual)

        # conv1 (1x1 + bias): h = W1 @ x + b1.  bf16 operands, f32 accumulate.
        # NOTE: contraction depth is only C, so the MXU is underutilized at
        # small C -- the softmax/VPU path is the real bottleneck here.
        h = jnp.dot(w1, idn.astype(jnp.bfloat16),
                    preferred_element_type=jnp.float32) + b1      # (C, N) f32
        h_bf = h.astype(jnp.bfloat16)

        mu = mu_init                              # (K, C) f32
        z = None
        for _ in range(STAGE_NUM):                # static -> unrolled
            # z = mu @ h -> (K, N): lane-dense over N, K packed on sublanes.
            z = jnp.dot(mu.astype(jnp.bfloat16), h_bf,
                        preferred_element_type=jnp.float32)       # (K, N) f32
            # softmax over K (sublane axis); denominator via EUP reciprocal.
            z = z - jnp.max(z, axis=0, keepdims=True)
            z = jnp.exp(z)
            z = z * pl.reciprocal(jnp.sum(z, axis=0, keepdims=True),
                                  approx=True)
            # normalize responsibilities over N (lane reduce + EUP reciprocal).
            z_ = z * pl.reciprocal(1e-6 + jnp.sum(z, axis=1, keepdims=True),
                                   approx=True)
            # mu = z_ @ h^T -> (K, C), contracting N.
            mu = lax.dot_general(z_.astype(jnp.bfloat16), h_bf,
                                 (((1,), (1,)), ((), ())),
                                 preferred_element_type=jnp.float32)
            # l2-normalize mu over the channel (lane) axis; sqrt/reciprocal on EUP.
            nrm = jnp.sqrt(jnp.sum(mu * mu, axis=1, keepdims=True))
            mu = mu * pl.reciprocal(1e-6 + nrm, approx=True)

        # reconstruction: x_r = mu^T @ z -> (C, N) (lane-dense), then ReLU.
        xr = lax.dot_general(mu.astype(jnp.bfloat16), z.astype(jnp.bfloat16),
                             (((0,), (0,)), ((), ())),
                             preferred_element_type=jnp.float32)
        xr = jnp.maximum(xr, 0.0)

        # conv2 (1x1, BN folded) + residual + ReLU.
        h2 = jnp.dot(w2, xr.astype(jnp.bfloat16),
                     preferred_element_type=jnp.float32) + b2
        out_ref[b] = jnp.maximum(h2 + idn, 0.0)
        mu_out_ref[b] = mu                        # (K, C) -- transposed in wrapper


def emau_forward(x_bcn, w1, b1, mu0_ck, w2, b2, *, bt=2):
    B, C, N = x_bcn.shape
    K = mu0_ck.shape[-1]
    if B % bt != 0:
        bt = 1
    mu0_kc = jnp.transpose(mu0_ck)                # (K, C): lane-dense over C

    # Rough per-step VMEM footprint with headroom (double-buffered x/out blocks
    # dominate); keeps the request portable to v7x's 64 MiB VMEM.
    block_bytes = 4 * bt * C * N
    vmem_limit = int(min(64 * 2**20, max(4 * 2**20, 16 * block_bytes)))

    out, mu_kc = pl.pallas_call(
        emau_kernel,
        out_shape=(jax.ShapeDtypeStruct((B, C, N), jnp.float32),
                   jax.ShapeDtypeStruct((B, K, C), jnp.float32)),
        grid_spec=pltpu.PrefetchScalarGridSpec(
            num_scalar_prefetch=0,
            grid=(B // bt,),
            in_specs=[
                pl.BlockSpec((bt, C, N), lambda g: (g, 0, 0)),
                pl.BlockSpec((C, C), lambda g: (0, 0)),
                pl.BlockSpec((C, 1), lambda g: (0, 0)),
                pl.BlockSpec((K, C), lambda g: (0, 0)),
                pl.BlockSpec((C, C), lambda g: (0, 0)),
                pl.BlockSpec((C, 1), lambda g: (0, 0)),
            ],
            out_specs=[
                pl.BlockSpec((bt, C, N), lambda g: (g, 0, 0)),
                pl.BlockSpec((bt, K, C), lambda g: (g, 0, 0)),
            ],
        ),
        # out reuses x's HBM buffer (x is donated; do not use x_bcn afterwards).
        input_output_aliases={0: 0},
        compiler_params=pltpu.CompilerParams(
            dimension_semantics=("parallel",),
            vmem_limit_bytes=vmem_limit),
    )(x_bcn, w1, b1, mu0_kc, w2, b2)
    # The module returns mu as (B, C, K).
    return out, jnp.transpose(mu_kc, (0, 2, 1))


def emau_reference(x_bcn, w1, b1, mu0, w2, b2):
    """Pure-JAX f32 reference mirroring the PyTorch forward (eval-mode BN folded)."""
    B, C, N = x_bcn.shape
    idn = x_bcn
    h = jnp.einsum('ij,bjn->bin', w1, x_bcn,
                   precision=lax.Precision.HIGHEST) + b1[None]     # (B, C, N)
    mu = jnp.broadcast_to(mu0[None], (B,) + mu0.shape)             # (B, C, K)
    z = None
    for _ in range(STAGE_NUM):
        z = jnp.einsum('bcn,bck->bnk', h, mu, precision=lax.Precision.HIGHEST)
        z = jax.nn.softmax(z, axis=2)
        z_ = z / (1e-6 + jnp.sum(z, axis=1, keepdims=True))
        mu = jnp.einsum('bcn,bnk->bck', h, z_, precision=lax.Precision.HIGHEST)
        mu = mu / (1e-6 + jnp.linalg.norm(mu, axis=1, keepdims=True))
    xr = jnp.einsum('bck,bnk->bcn', mu, z, precision=lax.Precision.HIGHEST)
    xr = jax.nn.relu(xr)
    h2 = jnp.einsum('ij,bjn->bin', w2, xr,
                    precision=lax.Precision.HIGHEST) + b2[None]
    out = jax.nn.relu(h2 + idn)
    return out, mu


if __name__ == "__main__":
    # B=4 with Bt=2 -> grid of 2 parallel steps (keeps both v7x TCs busy while
    # still batching two images per step).
    B, C, H, W, K = 4, 32, 16, 16, 8
    N = H * W

    key = jax.random.PRNGKey(0)
    k_x, k_mu, k_w1, k_b1, k_w2 = jax.random.split(key, 5)

    # Input (NCHW as in the PyTorch module).
    x = jax.random.normal(k_x, (B, C, H, W), dtype=jnp.float32)

    # mu buffer: normal(0, sqrt(2/k)), l2-normalized over the channel axis.
    mu0 = jax.random.normal(k_mu, (C, K), dtype=jnp.float32) * math.sqrt(2.0 / K)
    mu0 = mu0 / (1e-6 + jnp.linalg.norm(mu0, axis=0, keepdims=True))

    # conv1: 1x1 conv c->c with bias; weight ~ N(0, sqrt(2/(1*1*c))).
    w1 = jax.random.normal(k_w1, (C, C), dtype=jnp.float32) * math.sqrt(2.0 / C)
    b1 = jax.random.uniform(k_b1, (C, 1), dtype=jnp.float32,
                            minval=-1.0 / math.sqrt(C), maxval=1.0 / math.sqrt(C))

    # conv2: 1x1 conv c->c, no bias; weight ~ N(0, sqrt(2/c)).
    w2 = jax.random.normal(k_w2, (C, C), dtype=jnp.float32) * math.sqrt(2.0 / C)
    # Fold eval-mode BatchNorm (mean=0, var=1, gamma=1, beta=0, eps=1e-5).
    bn_scale = 1.0 / math.sqrt(1.0 + 1e-5)
    w2f = w2 * bn_scale
    b2f = jnp.zeros((C, 1), dtype=jnp.float32)

    x_bcn = x.reshape(B, C, N)

    # Compute the reference BEFORE the kernel: x_bcn's buffer is donated to the
    # kernel output via input_output_aliases and must not be read afterwards.
    ref_out, ref_mu = emau_reference(x_bcn, w1, b1, mu0, w2f, b2f)
    ref_out = ref_out.reshape(B, C, H, W)

    out_bcn, mu_out = emau_forward(x_bcn, w1, b1, mu0, w2f, b2f, bt=2)
    out = out_bcn.reshape(B, C, H, W)
    jax.block_until_ready((out, mu_out))

    # Tolerance accounts for bf16 MXU operands (f32 accumulation) and approx
    # EUP reciprocals inside the 3 EM iterations vs. the f32 reference.
    assert jnp.allclose(out, ref_out, atol=5e-2, rtol=5e-2), \
        float(jnp.max(jnp.abs(out - ref_out)))
    assert jnp.allclose(mu_out, ref_mu, atol=5e-2, rtol=5e-2), \
        float(jnp.max(jnp.abs(mu_out - ref_mu)))

    print("KERNEL_OK")
</pallas_src>

<mosaic_0001>
module attributes {stable_mosaic.version = 11 : i64} {
  func.func @emau_kernel(%arg0: i32, %arg1: memref<2x32x256xf32, #tpu.memory_space<vmem>>, %arg2: memref<32x32xf32, #tpu.memory_space<vmem>>, %arg3: memref<32x1xf32, #tpu.memory_space<vmem>>, %arg4: memref<8x32xf32, #tpu.memory_space<vmem>>, %arg5: memref<32x32xf32, #tpu.memory_space<vmem>>, %arg6: memref<32x1xf32, #tpu.memory_space<vmem>>, %arg7: memref<2x32x256xf32, #tpu.memory_space<vmem>>, %arg8: memref<2x8x32xf32, #tpu.memory_space<vmem>>) attributes {dimension_semantics = [#tpu.dimension_semantics<parallel>], iteration_bounds = array<i64: 2>, scalar_prefetch = 0 : i64, scratch_operands = 0 : i64, tpu.core_type = #tpu.core_type<tc>, window_params = [{transform_indices = @transform_0, window_bounds = array<i64: 2, 32, 256>}, {pipeline_mode = #tpu.pipeline_mode<synchronous>, transform_indices = @transform_1, window_bounds = array<i64: 32, 32>}, {pipeline_mode = #tpu.pipeline_mode<synchronous>, transform_indices = @transform_2, window_bounds = array<i64: 32, 1>}, {pipeline_mode = #tpu.pipeline_mode<synchronous>, transform_indices = @transform_3, window_bounds = array<i64: 8, 32>}, {pipeline_mode = #tpu.pipeline_mode<synchronous>, transform_indices = @transform_4, window_bounds = array<i64: 32, 32>}, {pipeline_mode = #tpu.pipeline_mode<synchronous>, transform_indices = @transform_5, window_bounds = array<i64: 32, 1>}, {transform_indices = @transform_6, window_bounds = array<i64: 2, 32, 256>}, {transform_indices = @transform_7, window_bounds = array<i64: 2, 8, 32>}]} {
    %c0 = arith.constant 0 : index
    %c0_0 = arith.constant 0 : index
    %0 = vector.load %arg2[%c0, %c0_0] : memref<32x32xf32, #tpu.memory_space<vmem>>, vector<32x32xf32>
    %1 = arith.truncf %0 : vector<32x32xf32> to vector<32x32xbf16>
    %c0_1 = arith.constant 0 : index
    %c0_2 = arith.constant 0 : index
    %2 = vector.load %arg5[%c0_1, %c0_2] : memref<32x32xf32, #tpu.memory_space<vmem>>, vector<32x32xf32>
    %3 = arith.truncf %2 : vector<32x32xf32> to vector<32x32xbf16>
    %c0_3 = arith.constant 0 : index
    %c0_4 = arith.constant 0 : index
    %4 = vector.load %arg3[%c0_3, %c0_4] : memref<32x1xf32, #tpu.memory_space<vmem>>, vector<32x1xf32>
    %c0_5 = arith.constant 0 : index
    %c0_6 = arith.constant 0 : index
    %5 = vector.load %arg6[%c0_5, %c0_6] : memref<32x1xf32, #tpu.memory_space<vmem>>, vector<32x1xf32>
    %c0_7 = arith.constant 0 : index
    %c0_8 = arith.constant 0 : index
    %6 = vector.load %arg4[%c0_7, %c0_8] : memref<8x32xf32, #tpu.memory_space<vmem>>, vector<8x32xf32>
    %c0_9 = arith.constant 0 : index
    %c0_10 = arith.constant 0 : index
    %c0_11 = arith.constant 0 : index
    %7 = vector.load %arg1[%c0_9, %c0_10, %c0_11] : memref<2x32x256xf32, #tpu.memory_space<vmem>>, vector<1x32x256xf32>
    %8 = vector.shape_cast %7 : vector<1x32x256xf32> to vector<32x256xf32>
    %9 = arith.truncf %8 : vector<32x256xf32> to vector<32x256xbf16>
    %cst = arith.constant dense<0.000000e+00> : vector<32x256xf32>
    %10 = tpu.matmul %1, %9, %cst {dimension_numbers = #tpu.dot_dimension_numbers<[1], [0], [0], [1], [0, 0, 1, 1], [], []>} : vector<32x32xbf16>, vector<32x256xbf16>, vector<32x256xf32> -> vector<32x256xf32>
    %11 = vector.broadcast %4 : vector<32x1xf32> to vector<32x256xf32>
    %12 = arith.addf %10, %11 : vector<32x256xf32>
    %13 = arith.truncf %12 : vector<32x256xf32> to vector<32x256xbf16>
    %14 = arith.truncf %6 : vector<8x32xf32> to vector<8x32xbf16>
    %cst_12 = arith.constant dense<0.000000e+00> : vector<8x256xf32>
    %15 = tpu.matmul %14, %13, %cst_12 {dimension_numbers = #tpu.dot_dimension_numbers<[1], [0], [0], [1], [0, 0, 1, 1], [], []>} : vector<8x32xbf16>, vector<32x256xbf16>, vector<8x256xf32> -> vector<8x256xf32>
    %cst_13 = arith.constant dense<0xFF800000> : vector<256xf32>
    %16 = vector.multi_reduction <maximumf>, %15, %cst_13 [0] : vector<8x256xf32> to vector<256xf32>
    %17 = vector.shape_cast %16 : vector<256xf32> to vector<1x256xf32>
    %18 = vector.broadcast %17 : vector<1x256xf32> to vector<8x256xf32>
    %19 = arith.subf %15, %18 : vector<8x256xf32>
    %20 = math.exp %19 : vector<8x256xf32>
    %cst_14 = arith.constant dense<0.000000e+00> : vector<256xf32>
    %21 = vector.multi_reduction <add>, %20, %cst_14 [0] : vector<8x256xf32> to vector<256xf32>
    %22 = vector.shape_cast %21 : vector<256xf32> to vector<1x256xf32>
    %23 = tpu.reciprocal %22 {approx = true} : vector<1x256xf32> -> vector<1x256xf32>
    %24 = vector.broadcast %23 : vector<1x256xf32> to vector<8x256xf32>
    %25 = arith.mulf %20, %24 : vector<8x256xf32>
    %cst_15 = arith.constant dense<0.000000e+00> : vector<8xf32>
    %26 = vector.multi_reduction <add>, %25, %cst_15 [1] : vector<8x256xf32> to vector<8xf32>
    %27 = vector.shape_cast %26 : vector<8xf32> to vector<8x1xf32>
    %cst_16 = arith.constant 9.99999997E-7 : f32
    %28 = vector.broadcast %cst_16 : f32 to vector<8x1xf32>
    %29 = arith.addf %28, %27 : vector<8x1xf32>
    %30 = tpu.reciprocal %29 {approx = true} : vector<8x1xf32> -> vector<8x1xf32>
    %31 = vector.broadcast %30 : vector<8x1xf32> to vector<8x256xf32>
    %32 = arith.mulf %25, %31 : vector<8x256xf32>
    %33 = arith.truncf %32 : vector<8x256xf32> to vector<8x256xbf16>
    %cst_17 = arith.constant dense<0.000000e+00> : vector<8x32xf32>
    %34 = tpu.matmul %33, %13, %cst_17 {dimension_numbers = #tpu.dot_dimension_numbers<[1], [1], [0], [0], [0, 0, 1, 0], [], []>} : vector<8x256xbf16>, vector<32x256xbf16>, vector<8x32xf32> -> vector<8x32xf32>
    %35 = arith.mulf %34, %34 : vector<8x32xf32>
    %cst_18 = arith.constant dense<0.000000e+00> : vector<8xf32>
    %36 = vector.multi_reduction <add>, %35, %cst_18 [1] : vector<8x32xf32> to vector<8xf32>
    %37 = vector.shape_cast %36 : vector<8xf32> to vector<8x1xf32>
    %38 = math.sqrt %37 : vector<8x1xf32>
    %cst_19 = arith.constant 9.99999997E-7 : f32
    %39 = vector.broadcast %cst_19 : f32 to vector<8x1xf32>
    %40 = arith.addf %39, %38 : vector<8x1xf32>
    %41 = tpu.reciprocal %40 {approx = true} : vector<8x1xf32> -> vector<8x1xf32>
    %42 = vector.broadcast %41 : vector<8x1xf32> to vector<8x32xf32>
    %43 = arith.mulf %34, %42 : vector<8x32xf32>
    %44 = arith.truncf %43 : vector<8x32xf32> to vector<8x32xbf16>
    %cst_20 = arith.constant dense<0.000000e+00> : vector<8x256xf32>
    %45 = tpu.matmul %44, %13, %cst_20 {dimension_numbers = #tpu.dot_dimension_numbers<[1], [0], [0], [1], [0, 0, 1, 1], [], []>} : vector<8x32xbf16>, vector<32x256xbf16>, vector<8x256xf32> -> vector<8x256xf32>
    %cst_21 = arith.constant dense<0xFF800000> : vector<256xf32>
    %46 = vector.multi_reduction <maximumf>, %45, %cst_21 [0] : vector<8x256xf32> to vector<256xf32>
    %47 = vector.shape_cast %46 : vector<256xf32> to vector<1x256xf32>
    %48 = vector.broadcast %47 : vector<1x256xf32> to vector<8x256xf32>
    %49 = arith.subf %45, %48 : vector<8x256xf32>
    %50 = math.exp %49 : vector<8x256xf32>
    %cst_22 = arith.constant dense<0.000000e+00> : vector<256xf32>
    %51 = vector.multi_reduction <add>, %50, %cst_22 [0] : vector<8x256xf32> to vector<256xf32>
    %52 = vector.shape_cast %51 : vector<256xf32> to vector<1x256xf32>
    %53 = tpu.reciprocal %52 {approx = true} : vector<1x256xf32> -> vector<1x256xf32>
    %54 = vector.broadcast %53 : vector<1x256xf32> to vector<8x256xf32>
    %55 = arith.mulf %50, %54 : vector<8x256xf32>
    %cst_23 = arith.constant dense<0.000000e+00> : vector<8xf32>
    %56 = vector.multi_reduction <add>, %55, %cst_23 [1] : vector<8x256xf32> to vector<8xf32>
    %57 = vector.shape_cast %56 : vector<8xf32> to vector<8x1xf32>
    %cst_24 = arith.constant 9.99999997E-7 : f32
    %58 = vector.broadcast %cst_24 : f32 to vector<8x1xf32>
    %59 = arith.addf %58, %57 : vector<8x1xf32>
    %60 = tpu.reciprocal %59 {approx = true} : vector<8x1xf32> -> vector<8x1xf32>
    %61 = vector.broadcast %60 : vector<8x1xf32> to vector<8x256xf32>
    %62 = arith.mulf %55, %61 : vector<8x256xf32>
    %63 = arith.truncf %62 : vector<8x256xf32> to vector<8x256xbf16>
    %cst_25 = arith.constant dense<0.000000e+00> : vector<8x32xf32>
    %64 = tpu.matmul %63, %13, %cst_25 {dimension_numbers = #tpu.dot_dimension_numbers<[1], [1], [0], [0], [0, 0, 1, 0], [], []>} : vector<8x256xbf16>, vector<32x256xbf16>, vector<8x32xf32> -> vector<8x32xf32>
    %65 = arith.mulf %64, %64 : vector<8x32xf32>
    %cst_26 = arith.constant dense<0.000000e+00> : vector<8xf32>
    %66 = vector.multi_reduction <add>, %65, %cst_26 [1] : vector<8x32xf32> to vector<8xf32>
    %67 = vector.shape_cast %66 : vector<8xf32> to vector<8x1xf32>
    %68 = math.sqrt %67 : vector<8x1xf32>
    %cst_27 = arith.constant 9.99999997E-7 : f32
    %69 = vector.broadcast %cst_27 : f32 to vector<8x1xf32>
    %70 = arith.addf %69, %68 : vector<8x1xf32>
    %71 = tpu.reciprocal %70 {approx = true} : vector<8x1xf32> -> vector<8x1xf32>
    %72 = vector.broadcast %71 : vector<8x1xf32> to vector<8x32xf32>
    %73 = arith.mulf %64, %72 : vector<8x32xf32>
    %74 = arith.truncf %73 : vector<8x32xf32> to vector<8x32xbf16>
    %cst_28 = arith.constant dense<0.000000e+00> : vector<8x256xf32>
    %75 = tpu.matmul %74, %13, %cst_28 {dimension_numbers = #tpu.dot_dimension_numbers<[1], [0], [0], [1], [0, 0, 1, 1], [], []>} : vector<8x32xbf16>, vector<32x256xbf16>, vector<8x256xf32> -> vector<8x256xf32>
    %cst_29 = arith.constant dense<0xFF800000> : vector<256xf32>
    %76 = vector.multi_reduction <maximumf>, %75, %cst_29 [0] : vector<8x256xf32> to vector<256xf32>
    %77 = vector.shape_cast %76 : vector<256xf32> to vector<1x256xf32>
    %78 = vector.broadcast %77 : vector<1x256xf32> to vector<8x256xf32>
    %79 = arith.subf %75, %78 : vector<8x256xf32>
    %80 = math.exp %79 : vector<8x256xf32>
    %cst_30 = arith.constant dense<0.000000e+00> : vector<256xf32>
    %81 = vector.multi_reduction <add>, %80, %cst_30 [0] : vector<8x256xf32> to vector<256xf32>
    %82 = vector.shape_cast %81 : vector<256xf32> to vector<1x256xf32>
    %83 = tpu.reciprocal %82 {approx = true} : vector<1x256xf32> -> vector<1x256xf32>
    %84 = vector.broadcast %83 : vector<1x256xf32> to vector<8x256xf32>
    %85 = arith.mulf %80, %84 : vector<8x256xf32>
    %cst_31 = arith.constant dense<0.000000e+00> : vector<8xf32>
    %86 = vector.multi_reduction <add>, %85, %cst_31 [1] : vector<8x256xf32> to vector<8xf32>
    %87 = vector.shape_cast %86 : vector<8xf32> to vector<8x1xf32>
    %cst_32 = arith.constant 9.99999997E-7 : f32
    %88 = vector.broadcast %cst_32 : f32 to vector<8x1xf32>
    %89 = arith.addf %88, %87 : vector<8x1xf32>
    %90 = tpu.reciprocal %89 {approx = true} : vector<8x1xf32> -> vector<8x1xf32>
    %91 = vector.broadcast %90 : vector<8x1xf32> to vector<8x256xf32>
    %92 = arith.mulf %85, %91 : vector<8x256xf32>
    %93 = arith.truncf %92 : vector<8x256xf32> to vector<8x256xbf16>
    %cst_33 = arith.constant dense<0.000000e+00> : vector<8x32xf32>
    %94 = tpu.matmul %93, %13, %cst_33 {dimension_numbers = #tpu.dot_dimension_numbers<[1], [1], [0], [0], [0, 0, 1, 0], [], []>} : vector<8x256xbf16>, vector<32x256xbf16>, vector<8x32xf32> -> vector<8x32xf32>
    %95 = arith.mulf %94, %94 : vector<8x32xf32>
    %cst_34 = arith.constant dense<0.000000e+00> : vector<8xf32>
    %96 = vector.multi_reduction <add>, %95, %cst_34 [1] : vector<8x32xf32> to vector<8xf32>
    %97 = vector.shape_cast %96 : vector<8xf32> to vector<8x1xf32>
    %98 = math.sqrt %97 : vector<8x1xf32>
    %cst_35 = arith.constant 9.99999997E-7 : f32
    %99 = vector.broadcast %cst_35 : f32 to vector<8x1xf32>
    %100 = arith.addf %99, %98 : vector<8x1xf32>
    %101 = tpu.reciprocal %100 {approx = true} : vector<8x1xf32> -> vector<8x1xf32>
    %102 = vector.broadcast %101 : vector<8x1xf32> to vector<8x32xf32>
    %103 = arith.mulf %94, %102 : vector<8x32xf32>
    %104 = arith.truncf %103 : vector<8x32xf32> to vector<8x32xbf16>
    %105 = arith.truncf %85 : vector<8x256xf32> to vector<8x256xbf16>
    %cst_36 = arith.constant dense<0.000000e+00> : vector<32x256xf32>
    %106 = tpu.matmul %104, %105, %cst_36 {dimension_numbers = #tpu.dot_dimension_numbers<[0], [0], [1], [1], [0, 1, 1, 1], [], []>} : vector<8x32xbf16>, vector<8x256xbf16>, vector<32x256xf32> -> vector<32x256xf32>
    %cst_37 = arith.constant 0.000000e+00 : f32
    %107 = vector.broadcast %cst_37 : f32 to vector<32x256xf32>
    %108 = arith.maximumf %106, %107 : vector<32x256xf32>
    %109 = arith.truncf %108 : vector<32x256xf32> to vector<32x256xbf16>
    %cst_38 = arith.constant dense<0.000000e+00> : vector<32x256xf32>
    %110 = tpu.matmul %3, %109, %cst_38 {dimension_numbers = #tpu.dot_dimension_numbers<[1], [0], [0], [1], [0, 0, 1, 1], [], []>} : vector<32x32xbf16>, vector<32x256xbf16>, vector<32x256xf32> -> vector<32x256xf32>
    %111 = vector.broadcast %5 : vector<32x1xf32> to vector<32x256xf32>
    %112 = arith.addf %110, %111 : vector<32x256xf32>
    %113 = arith.addf %112, %8 : vector<32x256xf32>
    %cst_39 = arith.constant 0.000000e+00 : f32
    %114 = vector.broadcast %cst_39 : f32 to vector<32x256xf32>
    %115 = arith.maximumf %113, %114 : vector<32x256xf32>
    %c0_40 = arith.constant 0 : index
    %c0_41 = arith.constant 0 : index
    %c0_42 = arith.constant 0 : index
    %116 = vector.load %arg7[%c0_40, %c0_41, %c0_42] : memref<2x32x256xf32, #tpu.memory_space<vmem>>, vector<1x32x256xf32>
    %117 = vector.shape_cast %116 : vector<1x32x256xf32> to vector<32x256xf32>
    %118 = vector.shape_cast %115 : vector<32x256xf32> to vector<1x32x256xf32>
    tpu.vector_store %arg7[%c0_40, %c0_41, %c0_42], %118 {strides = array<i32>} : memref<2x32x256xf32, #tpu.memory_space<vmem>>, vector<1x32x256xf32>,
    %c0_43 = arith.constant 0 : index
    %c0_44 = arith.constant 0 : index
    %c0_45 = arith.constant 0 : index
    %119 = vector.load %arg8[%c0_43, %c0_44, %c0_45] : memref<2x8x32xf32, #tpu.memory_space<vmem>>, vector<1x8x32xf32>
    %120 = vector.shape_cast %119 : vector<1x8x32xf32> to vector<8x32xf32>
    %121 = vector.shape_cast %103 : vector<8x32xf32> to vector<1x8x32xf32>
    tpu.vector_store %arg8[%c0_43, %c0_44, %c0_45], %121 {strides = array<i32>} : memref<2x8x32xf32, #tpu.memory_space<vmem>>, vector<1x8x32xf32>,
    %c1 = arith.constant 1 : index
    %c0_46 = arith.constant 0 : index
    %c0_47 = arith.constant 0 : index
    %122 = vector.load %arg1[%c1, %c0_46, %c0_47] : memref<2x32x256xf32, #tpu.memory_space<vmem>>, vector<1x32x256xf32>
    %123 = vector.shape_cast %122 : vector<1x32x256xf32> to vector<32x256xf32>
    %124 = arith.truncf %123 : vector<32x256xf32> to vector<32x256xbf16>
    %cst_48 = arith.constant dense<0.000000e+00> : vector<32x256xf32>
    %125 = tpu.matmul %1, %124, %cst_48 {dimension_numbers = #tpu.dot_dimension_numbers<[1], [0], [0], [1], [0, 0, 1, 1], [], []>} : vector<32x32xbf16>, vector<32x256xbf16>, vector<32x256xf32> -> vector<32x256xf32>
    %126 = vector.broadcast %4 : vector<32x1xf32> to vector<32x256xf32>
    %127 = arith.addf %125, %126 : vector<32x256xf32>
    %128 = arith.truncf %127 : vector<32x256xf32> to vector<32x256xbf16>
    %129 = arith.truncf %6 : vector<8x32xf32> to vector<8x32xbf16>
    %cst_49 = arith.constant dense<0.000000e+00> : vector<8x256xf32>
    %130 = tpu.matmul %129, %128, %cst_49 {dimension_numbers = #tpu.dot_dimension_numbers<[1], [0], [0], [1], [0, 0, 1, 1], [], []>} : vector<8x32xbf16>, vector<32x256xbf16>, vector<8x256xf32> -> vector<8x256xf32>
    %cst_50 = arith.constant dense<0xFF800000> : vector<256xf32>
    %131 = vector.multi_reduction <maximumf>, %130, %cst_50 [0] : vector<8x256xf32> to vector<256xf32>
    %132 = vector.shape_cast %131 : vector<256xf32> to vector<1x256xf32>
    %133 = vector.broadcast %132 : vector<1x256xf32> to vector<8x256xf32>
    %134 = arith.subf %130, %133 : vector<8x256xf32>
    %135 = math.exp %134 : vector<8x256xf32>
    %cst_51 = arith.constant dense<0.000000e+00> : vector<256xf32>
    %136 = vector.multi_reduction <add>, %135, %cst_51 [0] : vector<8x256xf32> to vector<256xf32>
    %137 = vector.shape_cast %136 : vector<256xf32> to vector<1x256xf32>
    %138 = tpu.reciprocal %137 {approx = true} : vector<1x256xf32> -> vector<1x256xf32>
    %139 = vector.broadcast %138 : vector<1x256xf32> to vector<8x256xf32>
    %140 = arith.mulf %135, %139 : vector<8x256xf32>
    %cst_52 = arith.constant dense<0.000000e+00> : vector<8xf32>
    %141 = vector.multi_reduction <add>, %140, %cst_52 [1] : vector<8x256xf32> to vector<8xf32>
    %142 = vector.shape_cast %141 : vector<8xf32> to vector<8x1xf32>
    %cst_53 = arith.constant 9.99999997E-7 : f32
    %143 = vector.broadcast %cst_53 : f32 to vector<8x1xf32>
    %144 = arith.addf %143, %142 : vector<8x1xf32>
    %145 = tpu.reciprocal %144 {approx = true} : vector<8x1xf32> -> vector<8x1xf32>
    %146 = vector.broadcast %145 : vector<8x1xf32> to vector<8x256xf32>
    %147 = arith.mulf %140, %146 : vector<8x256xf32>
    %148 = arith.truncf %147 : vector<8x256xf32> to vector<8x256xbf16>
    %cst_54 = arith.constant dense<0.000000e+00> : vector<8x32xf32>
    %149 = tpu.matmul %148, %128, %cst_54 {dimension_numbers = #tpu.dot_dimension_numbers<[1], [1], [0], [0], [0, 0, 1, 0], [], []>} : vector<8x256xbf16>, vector<32x256xbf16>, vector<8x32xf32> -> vector<8x32xf32>
    %150 = arith.mulf %149, %149 : vector<8x32xf32>
    %cst_55 = arith.constant dense<0.000000e+00> : vector<8xf32>
    %151 = vector.multi_reduction <add>, %150, %cst_55 [1] : vector<8x32xf32> to vector<8xf32>
    %152 = vector.shape_cast %151 : vector<8xf32> to vector<8x1xf32>
    %153 = math.sqrt %152 : vector<8x1xf32>
    %cst_56 = arith.constant 9.99999997E-7 : f32
    %154 = vector.broadcast %cst_56 : f32 to vector<8x1xf32>
    %155 = arith.addf %154, %153 : vector<8x1xf32>
    %156 = tpu.reciprocal %155 {approx = true} : vector<8x1xf32> -> vector<8x1xf32>
    %157 = vector.broadcast %156 : vector<8x1xf32> to vector<8x32xf32>
    %158 = arith.mulf %149, %157 : vector<8x32xf32>
    %159 = arith.truncf %158 : vector<8x32xf32> to vector<8x32xbf16>
    %cst_57 = arith.constant dense<0.000000e+00> : vector<8x256xf32>
    %160 = tpu.matmul %159, %128, %cst_57 {dimension_numbers = #tpu.dot_dimension_numbers<[1], [0], [0], [1], [0, 0, 1, 1], [], []>} : vector<8x32xbf16>, vector<32x256xbf16>, vector<8x256xf32> -> vector<8x256xf32>
    %cst_58 = arith.constant dense<0xFF800000> : vector<256xf32>
    %161 = vector.multi_reduction <maximumf>, %160, %cst_58 [0] : vector<8x256xf32> to vector<256xf32>
    %162 = vector.shape_cast %161 : vector<256xf32> to vector<1x256xf32>
    %163 = vector.broadcast %162 : vector<1x256xf32> to vector<8x256xf32>
    %164 = arith.subf %160, %163 : vector<8x256xf32>
    %165 = math.exp %164 : vector<8x256xf32>
    %cst_59 = arith.constant dense<0.000000e+00> : vector<256xf32>
    %166 = vector.multi_reduction <add>, %165, %cst_59 [0] : vector<8x256xf32> to vector<256xf32>
    %167 = vector.shape_cast %166 : vector<256xf32> to vector<1x256xf32>
    %168 = tpu.reciprocal %167 {approx = true} : vector<1x256xf32> -> vector<1x256xf32>
    %169 = vector.broadcast %168 : vector<1x256xf32> to vector<8x256xf32>
    %170 = arith.mulf %165, %169 : vector<8x256xf32>
    %cst_60 = arith.constant dense<0.000000e+00> : vector<8xf32>
    %171 = vector.multi_reduction <add>, %170, %cst_60 [1] : vector<8x256xf32> to vector<8xf32>
    %172 = vector.shape_cast %171 : vector<8xf32> to vector<8x1xf32>
    %cst_61 = arith.constant 9.99999997E-7 : f32
    %173 = vector.broadcast %cst_61 : f32 to vector<8x1xf32>
    %174 = arith.addf %173, %172 : vector<8x1xf32>
    %175 = tpu.reciprocal %174 {approx = true} : vector<8x1xf32> -> vector<8x1xf32>
    %176 = vector.broadcast %175 : vector<8x1xf32> to vector<8x256xf32>
    %177 = arith.mulf %170, %176 : vector<8x256xf32>
    %178 = arith.truncf %177 : vector<8x256xf32> to vector<8x256xbf16>
    %cst_62 = arith.constant dense<0.000000e+00> : vector<8x32xf32>
    %179 = tpu.matmul %178, %128, %cst_62 {dimension_numbers = #tpu.dot_dimension_numbers<[1], [1], [0], [0], [0, 0, 1, 0], [], []>} : vector<8x256xbf16>, vector<32x256xbf16>, vector<8x32xf32> -> vector<8x32xf32>
    %180 = arith.mulf %179, %179 : vector<8x32xf32>
    %cst_63 = arith.constant dense<0.000000e+00> : vector<8xf32>
    %181 = vector.multi_reduction <add>, %180, %cst_63 [1] : vector<8x32xf32> to vector<8xf32>
    %182 = vector.shape_cast %181 : vector<8xf32> to vector<8x1xf32>
    %183 = math.sqrt %182 : vector<8x1xf32>
    %cst_64 = arith.constant 9.99999997E-7 : f32
    %184 = vector.broadcast %cst_64 : f32 to vector<8x1xf32>
    %185 = arith.addf %184, %183 : vector<8x1xf32>
    %186 = tpu.reciprocal %185 {approx = true} : vector<8x1xf32> -> vector<8x1xf32>
    %187 = vector.broadcast %186 : vector<8x1xf32> to vector<8x32xf32>
    %188 = arith.mulf %179, %187 : vector<8x32xf32>
    %189 = arith.truncf %188 : vector<8x32xf32> to vector<8x32xbf16>
    %cst_65 = arith.constant dense<0.000000e+00> : vector<8x256xf32>
    %190 = tpu.matmul %189, %128, %cst_65 {dimension_numbers = #tpu.dot_dimension_numbers<[1], [0], [0], [1], [0, 0, 1, 1], [], []>} : vector<8x32xbf16>, vector<32x256xbf16>, vector<8x256xf32> -> vector<8x256xf32>
    %cst_66 = arith.constant dense<0xFF800000> : vector<256xf32>
    %191 = vector.multi_reduction <maximumf>, %190, %cst_66 [0] : vector<8x256xf32> to vector<256xf32>
    %192 = vector.shape_cast %191 : vector<256xf32> to vector<1x256xf32>
    %193 = vector.broadcast %192 : vector<1x256xf32> to vector<8x256xf32>
    %194 = arith.subf %190, %193 : vector<8x256xf32>
    %195 = math.exp %194 : vector<8x256xf32>
    %cst_67 = arith.constant dense<0.000000e+00> : vector<256xf32>
    %196 = vector.multi_reduction <add>, %195, %cst_67 [0] : vector<8x256xf32> to vector<256xf32>
    %197 = vector.shape_cast %196 : vector<256xf32> to vector<1x256xf32>
    %198 = tpu.reciprocal %197 {approx = true} : vector<1x256xf32> -> vector<1x256xf32>
    %199 = vector.broadcast %198 : vector<1x256xf32> to vector<8x256xf32>
    %200 = arith.mulf %195, %199 : vector<8x256xf32>
    %cst_68 = arith.constant dense<0.000000e+00> : vector<8xf32>
    %201 = vector.multi_reduction <add>, %200, %cst_68 [1] : vector<8x256xf32> to vector<8xf32>
    %202 = vector.shape_cast %201 : vector<8xf32> to vector<8x1xf32>
    %cst_69 = arith.constant 9.99999997E-7 : f32
    %203 = vector.broadcast %cst_69 : f32 to vector<8x1xf32>
    %204 = arith.addf %203, %202 : vector<8x1xf32>
    %205 = tpu.reciprocal %204 {approx = true} : vector<8x1xf32> -> vector<8x1xf32>
    %206 = vector.broadcast %205 : vector<8x1xf32> to vector<8x256xf32>
    %207 = arith.mulf %200, %206 : vector<8x256xf32>
    %208 = arith.truncf %207 : vector<8x256xf32> to vector<8x256xbf16>
    %cst_70 = arith.constant dense<0.000000e+00> : vector<8x32xf32>
    %209 = tpu.matmul %208, %128, %cst_70 {dimension_numbers = #tpu.dot_dimension_numbers<[1], [1], [0], [0], [0, 0, 1, 0], [], []>} : vector<8x256xbf16>, vector<32x256xbf16>, vector<8x32xf32> -> vector<8x32xf32>
    %210 = arith.mulf %209, %209 : vector<8x32xf32>
    %cst_71 = arith.constant dense<0.000000e+00> : vector<8xf32>
    %211 = vector.multi_reduction <add>, %210, %cst_71 [1] : vector<8x32xf32> to vector<8xf32>
    %212 = vector.shape_cast %211 : vector<8xf32> to vector<8x1xf32>
    %213 = math.sqrt %212 : vector<8x1xf32>
    %cst_72 = arith.constant 9.99999997E-7 : f32
    %214 = vector.broadcast %cst_72 : f32 to vector<8x1xf32>
    %215 = arith.addf %214, %213 : vector<8x1xf32>
    %216 = tpu.reciprocal %215 {approx = true} : vector<8x1xf32> -> vector<8x1xf32>
    %217 = vector.broadcast %216 : vector<8x1xf32> to vector<8x32xf32>
    %218 = arith.mulf %209, %217 : vector<8x32xf32>
    %219 = arith.truncf %218 : vector<8x32xf32> to vector<8x32xbf16>
    %220 = arith.truncf %200 : vector<8x256xf32> to vector<8x256xbf16>
    %cst_73 = arith.constant dense<0.000000e+00> : vector<32x256xf32>
    %221 = tpu.matmul %219, %220, %cst_73 {dimension_numbers = #tpu.dot_dimension_numbers<[0], [0], [1], [1], [0, 1, 1, 1], [], []>} : vector<8x32xbf16>, vector<8x256xbf16>, vector<32x256xf32> -> vector<32x256xf32>
    %cst_74 = arith.constant 0.000000e+00 : f32
    %222 = vector.broadcast %cst_74 : f32 to vector<32x256xf32>
    %223 = arith.maximumf %221, %222 : vector<32x256xf32>
    %224 = arith.truncf %223 : vector<32x256xf32> to vector<32x256xbf16>
    %cst_75 = arith.constant dense<0.000000e+00> : vector<32x256xf32>
    %225 = tpu.matmul %3, %224, %cst_75 {dimension_numbers = #tpu.dot_dimension_numbers<[1], [0], [0], [1], [0, 0, 1, 1], [], []>} : vector<32x32xbf16>, vector<32x256xbf16>, vector<32x256xf32> -> vector<32x256xf32>
    %226 = vector.broadcast %5 : vector<32x1xf32> to vector<32x256xf32>
    %227 = arith.addf %225, %226 : vector<32x256xf32>
    %228 = arith.addf %227, %123 : vector<32x256xf32>
    %cst_76 = arith.constant 0.000000e+00 : f32
    %229 = vector.broadcast %cst_76 : f32 to vector<32x256xf32>
    %230 = arith.maximumf %228, %229 : vector<32x256xf32>
    %c1_77 = arith.constant 1 : index
    %c0_78 = arith.constant 0 : index
    %c0_79 = arith.constant 0 : index
    %231 = vector.load %arg7[%c1_77, %c0_78, %c0_79] : memref<2x32x256xf32, #tpu.memory_space<vmem>>, vector<1x32x256xf32>
    %232 = vector.shape_cast %231 : vector<1x32x256xf32> to vector<32x256xf32>
    %233 = vector.shape_cast %230 : vector<32x256xf32> to vector<1x32x256xf32>
    tpu.vector_store %arg7[%c1_77, %c0_78, %c0_79], %233 {strides = array<i32>} : memref<2x32x256xf32, #tpu.memory_space<vmem>>, vector<1x32x256xf32>,
    %c1_80 = arith.constant 1 : index
    %c0_81 = arith.constant 0 : index
    %c0_82 = arith.constant 0 : index
    %234 = vector.load %arg8[%c1_80, %c0_81, %c0_82] : memref<2x8x32xf32, #tpu.memory_space<vmem>>, vector<1x8x32xf32>
    %235 = vector.shape_cast %234 : vector<1x8x32xf32> to vector<8x32xf32>
    %236 = vector.shape_cast %218 : vector<8x32xf32> to vector<1x8x32xf32>
    tpu.vector_store %arg8[%c1_80, %c0_81, %c0_82], %236 {strides = array<i32>} : memref<2x8x32xf32, #tpu.memory_space<vmem>>, vector<1x8x32xf32>,
    return
  }
  func.func @transform_0(%arg0: i32) -> (i32, i32, i32) {
    %c0_i32 = arith.constant 0 : i32
    %c0_i32_0 = arith.constant 0 : i32
    %c0_i32_1 = arith.constant 0 : i32
    return %arg0, %c0_i32, %c0_i32_0 : i32, i32, i32
  }
  func.func @transform_1(%arg0: i32) -> (i32, i32) {
    %c0_i32 = arith.constant 0 : i32
    %c0_i32_0 = arith.constant 0 : i32
    %c0_i32_1 = arith.constant 0 : i32
    return %c0_i32, %c0_i32_0 : i32, i32
  }
  func.func @transform_2(%arg0: i32) -> (i32, i32) {
    %c0_i32 = arith.constant 0 : i32
    %c0_i32_0 = arith.constant 0 : i32
    %c0_i32_1 = arith.constant 0 : i32
    return %c0_i32, %c0_i32_0 : i32, i32
  }
  func.func @transform_3(%arg0: i32) -> (i32, i32) {
    %c0_i32 = arith.constant 0 : i32
    %c0_i32_0 = arith.constant 0 : i32
    %c0_i32_1 = arith.constant 0 : i32
    return %c0_i32, %c0_i32_0 : i32, i32
  }
  func.func @transform_4(%arg0: i32) -> (i32, i32) {
    %c0_i32 = arith.constant 0 : i32
    %c0_i32_0 = arith.constant 0 : i32
    %c0_i32_1 = arith.constant 0 : i32
    return %c0_i32, %c0_i32_0 : i32, i32
  }
  func.func @transform_5(%arg0: i32) -> (i32, i32) {
    %c0_i32 = arith.constant 0 : i32
    %c0_i32_0 = arith.constant 0 : i32
    %c0_i32_1 = arith.constant 0 : i32
    return %c0_i32, %c0_i32_0 : i32, i32
  }
  func.func @transform_6(%arg0: i32) -> (i32, i32, i32) {
    %c0_i32 = arith.constant 0 : i32
    %c0_i32_0 = arith.constant 0 : i32
    %c0_i32_1 = arith.constant 0 : i32
    return %arg0, %c0_i32, %c0_i32_0 : i32, i32, i32
  }
  func.func @transform_7(%arg0: i32) -> (i32, i32, i32) {
    %c0_i32 = arith.constant 0 : i32
    %c0_i32_0 = arith.constant 0 : i32
    %c0_i32_1 = arith.constant 0 : i32
    return %arg0, %c0_i32, %c0_i32_0 : i32, i32, i32
  }
}

</mosaic_0001>

<bundles_post_ra>
// kernel: tpu_custom_call.1
= control target key start
LH: loop header
LB: loop body
LE: loop exit
PB: predicated region body
PF: predicated region fallthrough
CT: control target
= control target key end

     0   :  { %s2540_s0 = inlined_call_operand.hbm [shape: f32[4,32,256], index: 0, kind: input, shape index: {}, may-alias: {0,6}]   ;;  %s2541_s1 = inlined_call_operand.vmem [shape: f32[32,32], index: 1, kind: input, shape index: {}]   ;;  %s2542_s2 = inlined_call_operand.vmem [shape: f32[32,1], index: 2, kind: input, shape index: {}]   ;;  %s2543_s3 = inlined_call_operand.vmem [shape: f32[8,32], index: 3, kind: input, shape index: {}]   ;;  %s2544_s4 = inlined_call_operand.vmem [shape: f32[32,32], index: 4, kind: input, shape index: {}]   ;;  %s2545_s5 = inlined_call_operand.vmem [shape: f32[32,1], index: 5, kind: input, shape index: {}]   ;;  %s2546_s6 = inlined_call_operand.hbm [shape: f32[4,32,256], index: 6, kind: output, shape index: {0}, may-alias: {0,6}]   ;;  %s2547_s7 = inlined_call_operand.hbm [shape: f32[4,8,32], index: 7, kind: output, shape index: {1}]  }
   0x1   :  { %2548 = sst [smem:[#allocation12_spill]] %s2540_s0 }
   0x2   :  { %2549 = sst [smem:[#allocation13_spill]] %s2541_s1 }
   0x3   :  { %13 = vsyncpa [#allocation3], 0 }
   0x4   :  { %15 = vsyncpa [#allocation3 + $0x1], 0 }
   0x5   :  { %16 = vsyncpa [#allocation4], 0 }
   0x6   :  { %18 = vsyncpa [#allocation4 + $0x1], 0 }
   0x7   :  { %19 = vsyncpa [#allocation7], 0 }
   0x8   :  { %21 = vsyncpa [#allocation7 + $0x1], 0  ;;  %s2046_s24 = smov 0   ;;  %s2048_s25 = smov 0  }
   0x9   :  { %s2050_s26 = smov 0   ;;  %s2052_s27 = smov 0  }
   0xa LB: > { %s2067_s28 = sadd.s32 4294967295, %s1997_s27   ;;  %s1639_s29 = sadd.s32 4294967294, %s1997_s27   ;;  %s1997_s27 = sphi %s2052_s27, %s2563_s27   ;;  %s1993_s26 = sphi %s2050_s26, %s2562_s26   ;;  %s1989_s25 = sphi %s2048_s25, %s2561_s25   ;;  %s1985_s24 = sphi %s2046_s24, %s2560_s24  }
   0xb   : > { %s2071_s30 = sadd.s32 1, %s1997_s27   ;;  %s34_s8 = sadd.s32 1, %s1993_s26 }
   0xc   : > { %s31_s9 = ssub.s32 %s1997_s27, %s2071_s30  ;;  %p41_p0 = scmp.ne.s32.totalorder %s1993_s26, %s1989_s25 }
   0xd   : > { %p32_p1 = scmp.eq.s32.totalorder %s31_s9, 0  ;;  %p42_p2 = scmp.eq.s32.totalorder %s1997_s27, 0 }
   0xe   : > { %p47_p3 = scmp.ne.s32.totalorder %s1989_s25, %s1985_s24  ;;  %p48_p4 = scmp.eq.s32.totalorder %s2067_s28, 0 }
   0xf   : > { %s2083_s10 = scalar_select %p32_p1, %s1993_s26, %s34_s8  }
  0x10   : > { %p2085_p5 = por %p42_p2, %p41_p0  ;;  %p2089_p6 = por %p48_p4, %p47_p3 }
  0x11   : > { %2550 = sst [smem:[#allocation11_spill]] %s2083_s10  ;;  %p176_p7 = scmp.eq.s32.totalorder %s2067_s28, 1 }
  0x12   : > { %p182_p8 = scmp.eq.s32.totalorder %s1639_s29, 1  ;;  %p1734_p10 = scmp.lt.s32.totalorder %s1997_s27, 2 }
  0x13   : > { %p2096_p11 = por %p176_p7, %p41_p0  ;;  %s243_s15 = sand.u32 1, %s1993_s26  }
  0x14   : > { %p2100_p12 = por %p182_p8, %p47_p3  ;;  %s1713_s16 = sshll.u32 %s1997_s27, 7 }
  0x15   : > { %s1642_s17 = sshll.u32 %s243_s15, 7  ;;  %s2555_s0 = sld [smem:[#allocation12_spill]] }
  0x16   : > { %s247_s22 = scalar_lea.vmem [#allocation2], %s1642_s17  ;;  %p2111_p13 = pnand %p1734_p10, %p2085_p5 }
  0x17   : > { %s256_s23 = sshll.u32 %s247_s22, 4  ;;  %p1646_p0 = scmp.ge.s32.totalorder %s1997_s27, 1  ;;  %s257_s23 = int_to_ptr.vmem [resolvable:$true] %s256_s23 }
  0x18   : > { %p264_p1 = scmp.lt.s32.totalorder %s1997_s27, 3  ;;  %s244_s8 = scalar_lea.sflag [#allocation3], %s243_s15 }
  0x19   : > { %p1873_p3 = pneg %p2111_p13 }
  0x1b   : > { %s253_s20 = scalar_lea.hbm %s2555_s0, %s1713_s16  ;;  %s1876_s11 = scalar_lea.hbm %s2555_s0, 256 }
  0x1c   : > { %s254_s21 = sshll.u32 %s253_s20, 4  ;;  %s255_s21 = int_to_ptr.hbm [resolvable:$true] %s254_s21 }
  0x1d   : > { %s1869_s9 = sshra.s32 %s255_s21, 4  ;;  %s1870_s9 = int_to_ptr.hbm [resolvable:$true] %s1869_s9 }
  0x1e   : > { %s1871_s10 = scalar_lea.hbm %s1870_s9, 128  ;;  %p1877_p5 = scmp.lt.s32.totalorder %s1870_s9, %s2555_s0 }
  0x1f   : > { %p1872_p2 = scmp.ne.s32.totalorder %s1870_s9, %s1871_s10  ;;  %p1878_p8 = scmp.lt.s32.totalorder %s1876_s11, %s1871_s10 }
  0x21   : > { %p1874_p4 = pnand %p1873_p3, %p1872_p2  ;;  %p1879_p10 = por %p1878_p8, %p1877_p5 }
  0x23   : > { %p1875_p7 = pneg %p1874_p4 }
  0x25   : > { %p1880_p9 = pnand %p1879_p10, %p1875_p7 }
  0x27   : > { %1883 = shalt.err (!%p1880_p9)
}
  0x28   : > { %s1999_s15 = smov 256   ;;  %s2000_s20 = smov 16  }
  0x29   : > { %1726 = dma.hbm_to_vmem [thread:$0]  (!%p2111_p13), %s255_s21, 2048, %s257_s23, %s244_s8, %s1999_s15, %s1999_s15, %s2000_s20  }
  0x2a   : > { %p265_p2 = pnand %p1646_p0, %p264_p1 }
  0x2b   : > { %s2132_s22 = sand.u32 (!%p265_p2), 1, %s1989_s25  }
  0x2c   : > { %268 = sbr.rel (%p265_p2) target bundleno = 4625 (0x1211), region = 44  ;;  %s1647_s10 = sshll.u32 (!%p265_p2), %s2132_s22, 7 }
  0x2d   : > { %s271_s9 = scalar_lea.sflag (!%p265_p2), [#allocation3], %s2132_s22  ;;  %s2138_s16 = scalar_lea.vmem (!%p265_p2), [#allocation2], %s1647_s10 }
  0x31   : > { %1972 = dma.done.wait (%p2089_p6), %s271_s9, 2048  }
  0x32   : > { %1974 = vsyncadd (%p2089_p6), %s271_s9, 4294965248  ;;  %v2001_v0 = vmov 0   ;;  %v340_v1 = vld [vmem:[%s2138_s16 + $0x20] sm:$0xff]  ;;  %v342_v2 = vld [vmem:[%s2138_s16 + $0x30] sm:$0xff]  ;;  %s2557_s1 = sld [smem:[#allocation13_spill]]  ;;  %vm368_vm0 = vcmask 261120  }
  0x33   : > { %1776 = vset.pattern.permute.xlu1 %v2001_v0  ;;  %1775 = vset.pattern.permute.xlu0 %v2001_v0  ;;  %v341_v3 = vld [vmem:[%s2138_s16 + $0x28] sm:$0xff]  ;;  %v346_v4 = vpack.c.bf16 %v342_v2, %v340_v1  ;;  %v343_v5 = vld [vmem:[%s2138_s16 + $0x38] sm:$0xff]  ;;  %v336_v6 = vld [vmem:[%s2138_s16] sm:$0xff]  ;;  %vm797_vm5 = vcmask 1043456   ;;  %s1649_s11 = sshll.u32 %s2132_s22, 4  ;;  %vm790_vm8 = vcmask 64512  }
  0x34   : > { %v338_v7 = vld [vmem:[%s2138_s16 + $0x10] sm:$0xff]  ;;  %v347_v8 = vpack.c.bf16 %v343_v5, %v341_v3  ;;  %v337_v9 = vld [vmem:[%s2138_s16 + $0x8] sm:$0xff]  ;;  %v339_v10 = vld [vmem:[%s2138_s16 + $0x18] sm:$0xff]  ;;  %s2255_s18 = scalar_lea.vmem [#allocation6], %s1649_s11  ;;  %s2418_s21 = scalar_lea.vmem [#allocation5], %s1647_s10 }
  0x35   : > { %381 = vmatpush.bf16.msra.mxu0 %v346_v4  ;;  %v344_v11 = vpack.c.bf16 %v338_v7, %v336_v6  ;;  %v327_v14 = vld [vmem:[%s2542_s2] sm:$0xff]  ;;  %v345_v15 = vpack.c.bf16 %v339_v10, %v337_v9  ;;  %v329_v16 = vld [vmem:[%s2542_s2 + $0x10] sm:$0xff]  ;;  %v328_v18 = vld [vmem:[%s2542_s2 + $0x8] sm:$0xff]  ;;  %s1716_s10 = sshll.u32 %s2067_s28, 4  ;;  %s1530_s8 = sshll.u32 %s2255_s18, 4  ;;  %s1531_s8 = int_to_ptr.vmem [resolvable:$true] %s1530_s8 }
  0x36   : > { %400 = vmatpush.bf16.msra.mxu1 %v347_v8  ;;  %350 = vperm.xlu1 %1776, %v327_v14   ;;  %v330_v19 = vld [vmem:[%s2542_s2 + $0x18] sm:$0xff]  ;;  %v335_v45 = vld [vmem:[%s2543_s3] sm:$0xff]  ;;  %s1529_s29 = scalar_lea.hbm %s2547_s7, %s1716_s10  ;;  %s1500_s11 = scalar_lea.sflag [#allocation7], %s2132_s22 }
  0x37   : > { %360 = vperm.xlu0 %1775, %v329_v16   ;;  %v2221_v48 = vpack.c.bf16 %v335_v45, %v335_v45  ;;  %s1532_s17 = sshll.u32 %s1529_s29, 4  ;;  %s1919_s12 = scalar_lea.hbm %s2547_s7, 32  ;;  %s1533_s17 = int_to_ptr.hbm [resolvable:$true] %s1532_s17 }
  0x38   : > { %v315_v12 = vld [vmem:[%s2557_s1] sm:$0xff]  ;;  %v316_v13 = vld [vmem:[%s2557_s1 + $0x8] sm:$0xff]  ;;  %v317_v20 = vld [vmem:[%s2557_s1 + $0x10] sm:$0xff]  ;;  %s1913_s19 = sshra.s32 %s1533_s17, 4  ;;  %s1914_s19 = int_to_ptr.hbm [resolvable:$true] %s1913_s19 }
  0x39   : > { %v2164_v17 = vpack.c.bf16 %v316_v13, %v315_v12  ;;  %382 = vmatpush.bf16.msra.mxu0 %v344_v11  ;;  %v318_v21 = vld [vmem:[%s2557_s1 + $0x18] sm:$0xff]  ;;  %s1915_s15 = scalar_lea.hbm %s1914_s19, 16  ;;  %p1920_p0 = scmp.lt.s32.totalorder %s1914_s19, %s2547_s7 }
  0x3a   : > { %401 = vmatpush.bf16.msra.mxu1 %v345_v15  ;;  %v2182_v22 = vpack.c.bf16 %v318_v21, %v317_v20  ;;  %p1916_p6 = scmp.ne.s32.totalorder %s1914_s19, %s1915_s15  ;;  %p1921_p1 = scmp.lt.s32.totalorder %s1919_s12, %s1915_s15 }
  0x3c   : > { %1650 = vmatmul.msk.bf16.vlgmr.msra.gmra.mxu0 %vm368_vm0, %v2164_v17  ;;  %p1917_p9 = pnand %p1916_p6, %p2096_p11  ;;  %p1922_p3 = por %p1921_p1, %p1920_p0 }
  0x3d   : > { %1652 = vmatmul.msk.bf16.vlgmr.msra.gmra.mxu1 %vm368_vm0, %v2164_v17 }
  0x3e   : > { %355 = vperm.xlu1 %1776, %v328_v18   ;;  %p1918_p13 = pneg %p1917_p9 }
  0x3f   : > { %365 = vperm.xlu0 %1775, %v330_v19  }
  0x40   : > { %p1923_p4 = pnand %p1922_p3, %p1918_p13 }
  0x4c   : > { %1651 = vmatmul.msk.bf16.gmra.mxu0 %vm368_vm0, %v2182_v22 }
  0x4d   : > { %1653 = vmatmul.msk.bf16.gmra.mxu1 %vm368_vm0, %v2182_v22 }
  0xa8   : > { %v2188_v27 = vpop.permute.xlu1 %350 }
  0xa9   : > { %v2190_v28 = vpop.permute.xlu0 %360 }
  0xb0   : > { %v2192_v31 = vpop.permute.xlu1 %355 }
  0xb1   : > { %v2194_v32 = vpop.permute.xlu0 %365 }
  0xb9   : > { %v384_v23 = vpop.f32.mrf.mxu0 }
  0xba   : > { %v403_v24 = vpop.f32.mrf.mxu1  ;;  %v385_v43 = vadd.f32 %v384_v23, %v2188_v27 }
  0xbb   : > { %v404_v44 = vadd.f32 %v403_v24, %v2188_v27 }
  0xc1   : > { %v386_v25 = vpop.f32.mrf.mxu0 }
  0xc2   : > { %v405_v26 = vpop.f32.mrf.mxu1  ;;  %v387_v39 = vadd.f32 %v386_v25, %v2192_v31 }
  0xc3   : > { %v406_v41 = vadd.f32 %v405_v26, %v2192_v31 }
  0xc4   : > { %v2215_v46 = vpack.c.bf16 %v387_v39, %v385_v43 }
  0xc5   : > { %v2217_v47 = vpack.c.bf16 %v406_v41, %v404_v44 }
  0xc9   : > { %v389_v29 = vpop.f32.mrf.mxu0 }
  0xca   : > { %v408_v30 = vpop.f32.mrf.mxu1  ;;  %v390_v34 = vadd.f32 %v389_v29, %v2190_v28 }
  0xcb   : > { %v409_v37 = vadd.f32 %v408_v30, %v2190_v28 }
  0xd1   : > { %v391_v33 = vpop.f32.mrf.mxu0 }
  0xd2   : > { %v392_v35 = vadd.f32 %v391_v33, %v2194_v32  ;;  %v410_v36 = vpop.f32.mrf.mxu1 }
  0xd3   : > { %v411_v38 = vadd.f32 %v410_v36, %v2194_v32 }
  0xd4   : > { %v2201_v40 = vpack.c.bf16 %v392_v35, %v390_v34 }
  0xd5   : > { %v2204_v42 = vpack.c.bf16 %v411_v38, %v409_v37 }
  0xd6   : > { %427 = vmatpush.bf16.msra.mxu2 %v2201_v40  ;;  %545 = vmatpush.bf16.msrb.mxu0 %v2201_v40 }
  0xd7   : > { %440 = vmatpush.bf16.msra.mxu3 %v2204_v42  ;;  %558 = vmatpush.bf16.msrb.mxu1 %v2204_v42 }
  0xda   : > { %428 = vmatpush.bf16.msra.mxu2 %v2215_v46  ;;  %546 = vmatpush.bf16.msrb.mxu0 %v2215_v46 }
  0xdb   : > { %441 = vmatpush.bf16.msra.mxu3 %v2217_v47  ;;  %559 = vmatpush.bf16.msrb.mxu1 %v2217_v47 }
  0xdd   : > { %1654 = vmatmul.msk.bf16.vlgmr.msra.gmra.mxu2 %vm368_vm0, %v2221_v48 }
  0xde   : > { %496 = vmatpush.bf16.xpose.msrb.mxu2 %v2201_v40  ;;  %663 = vmatpush.bf16.msra.mxu0 %v2201_v40 }
  0xdf   : > { %509 = vmatpush.bf16.xpose.msrb.mxu3 %v2204_v42  ;;  %676 = vmatpush.bf16.msra.mxu1 %v2204_v42 }
  0xe0   : > { %1655 = vmatmul.msk.bf16.vlgmr.msra.gmra.mxu3 %vm368_vm0, %v2221_v48 }
  0xe2   : > { %664 = vmatpush.bf16.msra.mxu0 %v2215_v46 }
  0xe3   : > { %677 = vmatpush.bf16.msra.mxu1 %v2217_v47 }
  0xe6   : > { %497 = vmatpush.bf16.xpose.msrb.mxu2 %v2215_v46 }
  0xe7   : > { %510 = vmatpush.bf16.xpose.msrb.mxu3 %v2217_v47 }
  0xee   : > { %614 = vmatpush.bf16.xpose.msra.mxu2 %v2201_v40 }
  0xef   : > { %627 = vmatpush.bf16.xpose.msra.mxu3 %v2204_v42 }
  0xf6   : > { %615 = vmatpush.bf16.xpose.msra.mxu2 %v2215_v46 }
  0xf7   : > { %628 = vmatpush.bf16.xpose.msra.mxu3 %v2217_v47 }
 0x160   : > { %v430_v49 = vpop.f32.mrf.mxu2 }
 0x161   : > { %v447_v51 = vrot.slane %v430_v49, 4 }
 0x163   : > { %v443_v50 = vpop.f32.mrf.mxu3  ;;  %v448_v53 = vmax.f32 %v430_v49, %v447_v51 }
 0x164   : > { %v453_v52 = vrot.slane %v443_v50, 4 }
 0x165   : > { %v449_v55 = vrot.slane %v448_v53, 2 }
 0x166   : > { %v454_v54 = vmax.f32 %v443_v50, %v453_v52 }
 0x167   : > { %v450_v57 = vmax.f32 %v448_v53, %v449_v55 }
 0x168   : > { %v455_v56 = vrot.slane %v454_v54, 2  ;;  %v432_v59 = vpop.f32.mrf.mxu2 }
 0x169   : > { %v451_v61 = vrot.slane %v450_v57, 1 }
 0x16a   : > { %v456_v58 = vmax.f32 %v454_v54, %v455_v56 }
 0x16b   : > { %v445_v60 = vpop.f32.mrf.mxu3  ;;  %v452_v63 = vmax.f32 %v450_v57, %v451_v61 }
 0x16c   : > { %v457_v62 = vrot.slane %v456_v58, 1 }
 0x16d   : > { %v459_v1 = vsub.f32 %v430_v49, %v452_v63 }
 0x16e   : > { %v458_v0 = vmax.f32 %v456_v58, %v457_v62 }
 0x16f   : > { %v461_v3 = vmul.f32 1.442695, %v459_v1 }
 0x170   : > { %v460_v2 = vsub.f32 %v443_v50, %v458_v0 }
 0x171   : > { %1777 = vpow2.f32 %v461_v3 }
 0x172   : > { %v463_v4 = vmul.f32 1.442695, %v460_v2 }
 0x174   : > { %1779 = vpow2.f32 %v463_v4 }
 0x177   : > { %v1778_v5 = vpop.eup %1777 }
 0x178   : > { %v465_v7 = vrot.slane %v1778_v5, 4 }
 0x17a   : > { %v1780_v6 = vpop.eup %1779  ;;  %v466_v9 = vadd.f32 %v1778_v5, %v465_v7 }
 0x17b   : > { %v471_v8 = vrot.slane %v1780_v6, 4 }
 0x17c   : > { %v467_v11 = vrot.slane %v466_v9, 2 }
 0x17d   : > { %v472_v10 = vadd.f32 %v1780_v6, %v471_v8 }
 0x17e   : > { %v468_v13 = vadd.f32 %v467_v11, %v466_v9 }
 0x17f   : > { %v473_v12 = vrot.slane %v472_v10, 2 }
 0x180   : > { %v469_v15 = vrot.slane %v468_v13, 1 }
 0x181   : > { %v474_v14 = vadd.f32 %v473_v12, %v472_v10 }
 0x182   : > { %v470_v18 = vadd.f32 %v469_v15, %v468_v13 }
 0x183   : > { %v475_v16 = vrot.slane %v474_v14, 1 }
 0x184   : > { %1781 = vrcp.f32 %v470_v18 }
 0x185   : > { %v476_v19 = vadd.f32 %v475_v16, %v474_v14 }
 0x187   : > { %1783 = vrcp.f32 %v476_v19 }
 0x18a   : > { %v1782_v20 = vpop.eup %1781 }
 0x18b   : > { %v479_v23 = vmul.f32 %v1782_v20, %v1778_v5 }
 0x18d   : > { %v1784_v21 = vpop.eup %1783 }
 0x18e   : > { %v480_v24 = vmul.f32 %v1784_v21, %v1780_v6 }
 0x190   : > { %v481_v25 = vadd.f32 %v480_v24, %v479_v23 }
 0x192   : > { %482 = vadd.xlane.f32.xlu2 %v481_v25 }
 0x205   : > { %v483_v26 = vpop.xlane.xlu2 %482 }
 0x206   : > { %v484_v29 = vadd.f32 1e-06, %v483_v26 }
 0x208   : > { %1785 = vrcp.f32 %v484_v29 }
 0x20e   : > { %v1786_v30 = vpop.eup %1785 }
 0x20f   : > { %v486_v33 = vmul.f32 %v1786_v30, %v479_v23  ;;  %v487_v34 = vmul.f32 %v1786_v30, %v480_v24 }
 0x211   : > { %v488_v35 = vpack.c.bf16 %v486_v33, %v486_v33  ;;  %v489_v36 = vpack.c.bf16 %v487_v34, %v487_v34 }
 0x213   : > { %498 = vmatmul.bf16.vlgmr.msrb.gmra.mxu2 %v488_v35  ;;  %511 = vmatmul.bf16.vlgmr.msrb.gmra.mxu3 %v489_v36 }
 0x214   : > { %732 = vmatpush.bf16.xpose.msrb.mxu2 %v2201_v40  ;;  %745 = vmatpush.bf16.xpose.msrb.mxu3 %v2204_v42 }
 0x21c   : > { %733 = vmatpush.bf16.xpose.msrb.mxu2 %v2215_v46  ;;  %746 = vmatpush.bf16.xpose.msrb.mxu3 %v2217_v47 }
 0x296   : > { %v499_v37 = vpop.f32.mrf.mxu2  ;;  %v512_v38 = vpop.f32.mrf.mxu3 }
 0x297   : > { %v513_v39 = vadd.f32 %v512_v38, %v499_v37 }
 0x299   : > { %v516_v41 = vmul.f32 %v513_v39, %v513_v39 }
 0x29b   : > { %v517_v43 = vsel %vm368_vm0, %v516_v41, 0.0 }
 0x29c   : > { %518 = vadd.xlane.f32.xlu2 %v517_v43 }
 0x29e   : > { %v501_v44 = vpop.f32.mrf.mxu2  ;;  %v514_v45 = vpop.f32.mrf.mxu3 }
 0x30f   : > { %v519_v49 = vpop.xlane.xlu2 %518 }
 0x310   : > { %1787 = vrsqrt.f32 %v519_v49  ;;  %vm527_vm1 = vcmp.eq.f32.partialorder %v519_v49, inf  ;;  %v530_v47 = vand.u32 2147483648, %v519_v49  ;;  %vm529_vm2 = vcmp.eq.f32.partialorder %v519_v49, 0.0 }
 0x316   : > { %v1788_v50 = vpop.eup %1787 }
 0x317   : > { %v521_v51 = vmul.f32 %v1788_v50, %v519_v49 }
 0x319   : > { %v522_v40 = vmul.f32 %v1788_v50, %v521_v51 }
 0x31b   : > { %v523_v52 = vmul.f32 0.5, %v522_v40 }
 0x31d   : > { %v524_v42 = vsub.f32 1.5, %v523_v52 }
 0x31f   : > { %v525_v53 = vmul.f32 %v1788_v50, %v524_v42 }
 0x321   : > { %v526_v46 = vmul.f32 %v525_v53, %v519_v49 }
 0x323   : > { %v528_v54 = vsel %vm527_vm1, %v519_v49, %v526_v46 }
 0x324   : > { %v531_v55 = vsel %vm529_vm2, %v530_v47, %v528_v54 }
 0x325   : > { %v532_v56 = vadd.f32 1e-06, %v531_v55 }
 0x327   : > { %1789 = vrcp.f32 %v532_v56 }
 0x32d   : > { %v1790_v57 = vpop.eup %1789 }
 0x32e   : > { %v534_v58 = vmul.f32 %v1790_v57, %v513_v39 }
 0x330   : > { %v535_v59 = vpack.c.bf16 %v534_v58, %v534_v58 }
 0x332   : > { %1656 = vmatmul.msk.bf16.vlgmr.msrb.gmra.mxu0 %vm368_vm0, %v535_v59  ;;  %1657 = vmatmul.msk.bf16.vlgmr.msrb.gmra.mxu1 %vm368_vm0, %v535_v59 }
 0x3af   : > { %v548_v60 = vpop.f32.mrf.mxu0  ;;  %v561_v61 = vpop.f32.mrf.mxu1 }
 0x3b0   : > { %v565_v62 = vrot.slane %v548_v60, 4  ;;  %v571_v63 = vrot.slane %v561_v61, 4 }
 0x3b2   : > { %v566_v0 = vmax.f32 %v548_v60, %v565_v62  ;;  %v572_v1 = vmax.f32 %v561_v61, %v571_v63 }
 0x3b4   : > { %v567_v2 = vrot.slane %v566_v0, 2  ;;  %v573_v3 = vrot.slane %v572_v1, 2 }
 0x3b6   : > { %v568_v4 = vmax.f32 %v566_v0, %v567_v2  ;;  %v574_v5 = vmax.f32 %v572_v1, %v573_v3 }
 0x3b7   : > { %v550_v6 = vpop.f32.mrf.mxu0  ;;  %v563_v7 = vpop.f32.mrf.mxu1 }
 0x3b8   : > { %v569_v8 = vrot.slane %v568_v4, 1  ;;  %v575_v9 = vrot.slane %v574_v5, 1 }
 0x3ba   : > { %v570_v10 = vmax.f32 %v568_v4, %v569_v8  ;;  %v576_v11 = vmax.f32 %v574_v5, %v575_v9 }
 0x3bc   : > { %v577_v12 = vsub.f32 %v548_v60, %v570_v10  ;;  %v578_v13 = vsub.f32 %v561_v61, %v576_v11 }
 0x3be   : > { %v579_v14 = vmul.f32 1.442695, %v577_v12  ;;  %v581_v15 = vmul.f32 1.442695, %v578_v13 }
 0x3c0   : > { %1791 = vpow2.f32 %v579_v14 }
 0x3c1   : > { %1793 = vpow2.f32 %v581_v15 }
 0x3c6   : > { %v1792_v16 = vpop.eup %1791 }
 0x3c7   : > { %v1794_v18 = vpop.eup %1793  ;;  %v583_v19 = vrot.slane %v1792_v16, 4 }
 0x3c8   : > { %v589_v20 = vrot.slane %v1794_v18, 4 }
 0x3c9   : > { %v584_v21 = vadd.f32 %v1792_v16, %v583_v19 }
 0x3ca   : > { %v590_v23 = vadd.f32 %v1794_v18, %v589_v20 }
 0x3cb   : > { %v585_v24 = vrot.slane %v584_v21, 2 }
 0x3cc   : > { %v591_v25 = vrot.slane %v590_v23, 2 }
 0x3cd   : > { %v586_v26 = vadd.f32 %v585_v24, %v584_v21 }
 0x3ce   : > { %v592_v29 = vadd.f32 %v591_v25, %v590_v23 }
 0x3cf   : > { %v587_v30 = vrot.slane %v586_v26, 1 }
 0x3d0   : > { %v593_v33 = vrot.slane %v592_v29, 1 }
 0x3d1   : > { %v588_v34 = vadd.f32 %v587_v30, %v586_v26 }
 0x3d2   : > { %v594_v35 = vadd.f32 %v593_v33, %v592_v29 }
 0x3d3   : > { %1795 = vrcp.f32 %v588_v34 }
 0x3d4   : > { %1797 = vrcp.f32 %v594_v35 }
 0x3d9   : > { %v1796_v36 = vpop.eup %1795 }
 0x3da   : > { %v1798_v37 = vpop.eup %1797  ;;  %v597_v38 = vmul.f32 %v1796_v36, %v1792_v16 }
 0x3db   : > { %v598_v39 = vmul.f32 %v1798_v37, %v1794_v18 }
 0x3dd   : > { %v599_v41 = vadd.f32 %v598_v39, %v597_v38 }
 0x3df   : > { %600 = vadd.xlane.f32.xlu0 %v599_v41 }
 0x452   : > { %v601_v43 = vpop.xlane.xlu0 %600 }
 0x453   : > { %v602_v44 = vadd.f32 1e-06, %v601_v43 }
 0x455   : > { %1799 = vrcp.f32 %v602_v44 }
 0x45b   : > { %v1800_v45 = vpop.eup %1799 }
 0x45c   : > { %v604_v49 = vmul.f32 %v1800_v45, %v597_v38  ;;  %v605_v50 = vmul.f32 %v1800_v45, %v598_v39 }
 0x45e   : > { %v606_v51 = vpack.c.bf16 %v604_v49, %v604_v49  ;;  %v607_v40 = vpack.c.bf16 %v605_v50, %v605_v50 }
 0x460   : > { %616 = vmatmul.bf16.vlgmr.msra.gmra.mxu2 %v606_v51  ;;  %629 = vmatmul.bf16.vlgmr.msra.gmra.mxu3 %v607_v40 }
 0x4e3   : > { %v617_v52 = vpop.f32.mrf.mxu2  ;;  %v630_v42 = vpop.f32.mrf.mxu3 }
 0x4e4   : > { %v631_v53 = vadd.f32 %v630_v42, %v617_v52 }
 0x4e6   : > { %v634_v46 = vmul.f32 %v631_v53, %v631_v53 }
 0x4e8   : > { %v635_v47 = vsel %vm368_vm0, %v634_v46, 0.0 }
 0x4e9   : > { %636 = vadd.xlane.f32.xlu1 %v635_v47 }
 0x4eb   : > { %v619_v54 = vpop.f32.mrf.mxu2  ;;  %v632_v55 = vpop.f32.mrf.mxu3 }
 0x55c   : > { %v637_v56 = vpop.xlane.xlu1 %636 }
 0x55d   : > { %1801 = vrsqrt.f32 %v637_v56  ;;  %vm645_vm3 = vcmp.eq.f32.partialorder %v637_v56, inf  ;;  %v648_v0 = vand.u32 2147483648, %v637_v56  ;;  %vm647_vm4 = vcmp.eq.f32.partialorder %v637_v56, 0.0 }
 0x563   : > { %v1802_v57 = vpop.eup %1801 }
 0x564   : > { %v639_v58 = vmul.f32 %v1802_v57, %v637_v56 }
 0x566   : > { %v640_v59 = vmul.f32 %v1802_v57, %v639_v58 }
 0x568   : > { %v641_v60 = vmul.f32 0.5, %v640_v59 }
 0x56a   : > { %v642_v61 = vsub.f32 1.5, %v641_v60 }
 0x56c   : > { %v643_v62 = vmul.f32 %v1802_v57, %v642_v61 }
 0x56e   : > { %v644_v63 = vmul.f32 %v643_v62, %v637_v56 }
 0x570   : > { %v646_v1 = vsel %vm645_vm3, %v637_v56, %v644_v63 }
 0x571   : > { %v649_v2 = vsel %vm647_vm4, %v648_v0, %v646_v1 }
 0x572   : > { %v650_v3 = vadd.f32 1e-06, %v649_v2 }
 0x574   : > { %1803 = vrcp.f32 %v650_v3 }
 0x57a   : > { %v1804_v4 = vpop.eup %1803 }
 0x57b   : > { %v652_v5 = vmul.f32 %v1804_v4, %v631_v53 }
 0x57d   : > { %v653_v6 = vpack.c.bf16 %v652_v5, %v652_v5 }
 0x57f   : > { %1658 = vmatmul.msk.bf16.vlgmr.msra.gmra.mxu0 %vm368_vm0, %v653_v6  ;;  %1659 = vmatmul.msk.bf16.vlgmr.msra.gmra.mxu1 %vm368_vm0, %v653_v6 }
 0x5fc   : > { %v666_v7 = vpop.f32.mrf.mxu0  ;;  %v679_v8 = vpop.f32.mrf.mxu1 }
 0x5fd   : > { %v683_v9 = vrot.slane %v666_v7, 4  ;;  %v689_v10 = vrot.slane %v679_v8, 4 }
 0x5ff   : > { %v684_v11 = vmax.f32 %v666_v7, %v683_v9  ;;  %v690_v12 = vmax.f32 %v679_v8, %v689_v10 }
 0x601   : > { %v685_v13 = vrot.slane %v684_v11, 2  ;;  %v691_v14 = vrot.slane %v690_v12, 2 }
 0x603   : > { %v686_v15 = vmax.f32 %v684_v11, %v685_v13  ;;  %v692_v16 = vmax.f32 %v690_v12, %v691_v14 }
 0x604   : > { %v668_v18 = vpop.f32.mrf.mxu0  ;;  %v681_v19 = vpop.f32.mrf.mxu1 }
 0x605   : > { %v687_v20 = vrot.slane %v686_v15, 1  ;;  %v693_v21 = vrot.slane %v692_v16, 1 }
 0x607   : > { %v688_v23 = vmax.f32 %v686_v15, %v687_v20  ;;  %v694_v24 = vmax.f32 %v692_v16, %v693_v21 }
 0x609   : > { %v695_v25 = vsub.f32 %v666_v7, %v688_v23  ;;  %v696_v26 = vsub.f32 %v679_v8, %v694_v24  ;;  %v2260_v24 = vld [vmem:[%s2138_s16 + $0x60] sm:$0xff] }
 0x60b   : > { %v697_v29 = vmul.f32 1.442695, %v695_v25  ;;  %v699_v30 = vmul.f32 1.442695, %v696_v26  ;;  %v2263_v25 = vld [vmem:[%s2138_s16 + $0x70] sm:$0xff]  ;;  %v2266_v26 = vld [vmem:[%s2138_s16 + $0x68] sm:$0xff] }
 0x60d   : > { %1805 = vpow2.f32 %v697_v29  ;;  %v954_v29 = vpack.c.bf16 %v2263_v25, %v2260_v24 }
 0x60e   : > { %1807 = vpow2.f32 %v699_v30  ;;  %v2271_v30 = vld [vmem:[%s2138_s16 + $0x78] sm:$0xff] }
 0x613   : > { %v1806_v33 = vpop.eup %1805 }
 0x614   : > { %v1808_v34 = vpop.eup %1807  ;;  %v701_v35 = vrot.slane %v1806_v33, 4 }
 0x615   : > { %v707_v36 = vrot.slane %v1808_v34, 4 }
 0x616   : > { %v702_v37 = vadd.f32 %v1806_v33, %v701_v35  ;;  %v955_v35 = vpack.c.bf16 %v2271_v30, %v2266_v26 }
 0x617   : > { %v708_v38 = vadd.f32 %v1808_v34, %v707_v36  ;;  %v2282_v36 = vld [vmem:[%s2138_s16 + $0x48] sm:$0xff] }
 0x618   : > { %v703_v39 = vrot.slane %v702_v37, 2 }
 0x619   : > { %v709_v41 = vrot.slane %v708_v38, 2 }
 0x61a   : > { %v704_v43 = vadd.f32 %v703_v39, %v702_v37  ;;  %v2285_v37 = vld [vmem:[%s2138_s16 + $0x58] sm:$0xff] }
 0x61b   : > { %v710_v44 = vadd.f32 %v709_v41, %v708_v38  ;;  %v953_v39 = vpack.c.bf16 %v2285_v37, %v2282_v36 }
 0x61c   : > { %v705_v45 = vrot.slane %v704_v43, 1 }
 0x61d   : > { %v711_v49 = vrot.slane %v710_v44, 1 }
 0x61e   : > { %v706_v50 = vadd.f32 %v705_v45, %v704_v43 }
 0x61f   : > { %v712_v51 = vadd.f32 %v711_v49, %v710_v44 }
 0x620   : > { %1809 = vrcp.f32 %v706_v50 }
 0x621   : > { %1811 = vrcp.f32 %v712_v51 }
 0x626   : > { %v1810_v40 = vpop.eup %1809 }
 0x627   : > { %v1812_v52 = vpop.eup %1811  ;;  %v715_v42 = vmul.f32 %v1810_v40, %v1806_v33  ;;  %v2274_v33 = vld [vmem:[%s2138_s16 + $0x40] sm:$0xff] }
 0x628   : > { %v716_v53 = vmul.f32 %v1812_v52, %v1808_v34  ;;  %v2277_v34 = vld [vmem:[%s2138_s16 + $0x50] sm:$0xff] }
 0x629   : > { %v772_v46 = vpack.c.bf16 %v715_v42, %v715_v42  ;;  %v952_v38 = vpack.c.bf16 %v2277_v34, %v2274_v33 }
 0x62a   : > { %v717_v47 = vadd.f32 %v716_v53, %v715_v42  ;;  %v773_v54 = vpack.c.bf16 %v716_v53, %v716_v53 }
 0x62b   : > { %v799_v55 = vsel %vm797_vm5, %v772_v46, 0 }
 0x62c   : > { %718 = vadd.xlane.f32.xlu2 %v717_v47  ;;  %811 = vmatpush.bf16.msrb.mxu0 %v799_v55  ;;  %v802_v56 = vsel %vm797_vm5, %v773_v54, 0 }
 0x62d   : > { %830 = vmatpush.bf16.msrb.mxu1 %v802_v56 }
 0x630   : > { %962 = vmatpush.bf16.msra.mxu0 %v954_v29 }
 0x631   : > { %981 = vmatpush.bf16.msra.mxu1 %v955_v35 }
 0x634   : > { %963 = vmatpush.bf16.msra.mxu0 %v952_v38 }
 0x635   : > { %982 = vmatpush.bf16.msra.mxu1 %v953_v39 }
 0x69f   : > { %v719_v57 = vpop.xlane.xlu2 %718 }
 0x6a0   : > { %v720_v58 = vadd.f32 1e-06, %v719_v57 }
 0x6a2   : > { %1813 = vrcp.f32 %v720_v58 }
 0x6a8   : > { %v1814_v59 = vpop.eup %1813 }
 0x6a9   : > { %v722_v60 = vmul.f32 %v1814_v59, %v715_v42  ;;  %v723_v61 = vmul.f32 %v1814_v59, %v716_v53 }
 0x6ab   : > { %v724_v62 = vpack.c.bf16 %v722_v60, %v722_v60  ;;  %v725_v63 = vpack.c.bf16 %v723_v61, %v723_v61  ;;  %v322_v60 = vld [vmem:[%s2544_s4 + $0x8] sm:$0xff] }
 0x6ad   : > { %734 = vmatmul.bf16.vlgmr.msrb.gmra.mxu2 %v724_v62  ;;  %747 = vmatmul.bf16.vlgmr.msrb.gmra.mxu3 %v725_v63 }
 0x730   : > { %v735_v0 = vpop.f32.mrf.mxu2  ;;  %v748_v1 = vpop.f32.mrf.mxu3 }
 0x731   : > { %v749_v2 = vadd.f32 %v748_v1, %v735_v0 }
 0x733   : > { %v752_v3 = vmul.f32 %v749_v2, %v749_v2 }
 0x735   : > { %v753_v4 = vsel %vm368_vm0, %v752_v3, 0.0 }
 0x736   : > { %754 = vadd.xlane.f32.xlu2 %v753_v4  ;;  %v323_v4 = vld [vmem:[%s2544_s4 + $0x10] sm:$0xff] }
 0x738   : > { %v737_v5 = vpop.f32.mrf.mxu2  ;;  %v750_v6 = vpop.f32.mrf.mxu3 }
 0x739   : > { %v324_v5 = vld [vmem:[%s2544_s4 + $0x18] sm:$0xff] }
 0x7a9   : > { %v755_v7 = vpop.xlane.xlu2 %754 }
 0x7aa   : > { %1815 = vrsqrt.f32 %v755_v7  ;;  %vm763_vm6 = vcmp.eq.f32.partialorder %v755_v7, inf  ;;  %v766_v15 = vand.u32 2147483648, %v755_v7  ;;  %vm765_vm7 = vcmp.eq.f32.partialorder %v755_v7, 0.0 }
 0x7b0   : > { %v1816_v8 = vpop.eup %1815 }
 0x7b1   : > { %v757_v9 = vmul.f32 %v1816_v8, %v755_v7 }
 0x7b3   : > { %v758_v10 = vmul.f32 %v1816_v8, %v757_v9 }
 0x7b5   : > { %v759_v11 = vmul.f32 0.5, %v758_v10 }
 0x7b7   : > { %v760_v12 = vsub.f32 1.5, %v759_v11 }
 0x7b9   : > { %v761_v13 = vmul.f32 %v1816_v8, %v760_v12  ;;  %v2321_v8 = vpack.c.bf16 %v324_v5, %v323_v4 }
 0x7bb   : > { %v762_v14 = vmul.f32 %v761_v13, %v755_v7 }
 0x7bd   : > { %v764_v16 = vsel %vm763_vm6, %v755_v7, %v762_v14 }
 0x7be   : > { %v767_v18 = vsel %vm765_vm7, %v766_v15, %v764_v16 }
 0x7bf   : > { %v768_v19 = vadd.f32 1e-06, %v767_v18 }
 0x7c1   : > { %1817 = vrcp.f32 %v768_v19 }
 0x7c7   : > { %v1818_v20 = vpop.eup %1817 }
 0x7c8   : > { %v770_v21 = vmul.f32 %v1818_v20, %v749_v2 }
 0x7ca   : > { %v771_v23 = vpack.c.bf16 %v770_v21, %v770_v21  ;;  %942 = vst.msk [vmem:[%s2255_s18] sm:$0xff] %vm368_vm0, %v770_v21 }
 0x7cc   : > { %774 = vxpose.xlu2.c.b16.start.end [1/1] (short) (narrow) %v771_v23, 32 }
 0x86d   : > { %v782_v41 = vpop.trf.xlu2 }
 0x86e   : > { %1660 = vmatmul.msk.bf16.vlgmr.msrb.gmra.mxu0 %vm790_vm8, %v782_v41  ;;  %1662 = vmatmul.msk.bf16.vlgmr.msrb.gmra.mxu1 %vm790_vm8, %v782_v41 }
 0x87d   : > { %v783_v43 = vpop.trf.xlu2 }
 0x87e   : > { %1661 = vmatmul.msk.bf16.gmra.mxu0 %vm790_vm8, %v783_v43  ;;  %1663 = vmatmul.msk.bf16.gmra.mxu1 %vm790_vm8, %v783_v43 }
 0x88e   : > { %1676 = vmatmul.msk.bf16.vlgmr.msra.gmra.mxu0 %vm368_vm0, %v2164_v17  ;;  %1678 = vmatmul.msk.bf16.vlgmr.msra.gmra.mxu1 %vm368_vm0, %v2164_v17 }
 0x89e   : > { %1677 = vmatmul.msk.bf16.gmra.mxu0 %vm368_vm0, %v2182_v22  ;;  %1679 = vmatmul.msk.bf16.gmra.mxu1 %vm368_vm0, %v2182_v22  ;;  %v321_v22 = vld [vmem:[%s2544_s4] sm:$0xff] }
 0x89f   : > { %v2309_v1 = vpack.c.bf16 %v322_v60, %v321_v22 }
 0x8eb   : > { %v813_v44 = vpop.f32.mrf.mxu0  ;;  %v832_v45 = vpop.f32.mrf.mxu1 }
 0x8ec   : > { %v842_v58 = vmax.f32 %v813_v44, 0.0  ;;  %v843_v59 = vmax.f32 %v832_v45, 0.0 }
 0x8f3   : > { %v815_v49 = vpop.f32.mrf.mxu0  ;;  %v834_v50 = vpop.f32.mrf.mxu1 }
 0x8f4   : > { %v844_v55 = vmax.f32 %v815_v49, 0.0  ;;  %v845_v17 = vmax.f32 %v834_v50, 0.0 }
 0x8f6   : > { %v850_v61 = vpack.c.bf16 %v844_v55, %v842_v58  ;;  %v851_v62 = vpack.c.bf16 %v845_v17, %v843_v59 }
 0x8fb   : > { %v818_v51 = vpop.f32.mrf.mxu0  ;;  %v837_v40 = vpop.f32.mrf.mxu1 }
 0x8fc   : > { %v846_v53 = vmax.f32 %v818_v51, 0.0  ;;  %v847_v46 = vmax.f32 %v837_v40, 0.0 }
 0x903   : > { %v820_v52 = vpop.f32.mrf.mxu0  ;;  %v839_v42 = vpop.f32.mrf.mxu1 }
 0x904   : > { %v848_v47 = vmax.f32 %v820_v52, 0.0  ;;  %v849_v54 = vmax.f32 %v839_v42, 0.0 }
 0x906   : > { %v852_v56 = vpack.c.bf16 %v848_v47, %v846_v53  ;;  %v853_v57 = vpack.c.bf16 %v849_v54, %v847_v46 }
 0x908   : > { %886 = vmatpush.bf16.msra.mxu2 %v852_v56  ;;  %905 = vmatpush.bf16.msra.mxu3 %v853_v57 }
 0x90b   : > { %v965_v63 = vpop.f32.mrf.mxu0  ;;  %v984_v0 = vpop.f32.mrf.mxu1 }
 0x90c   : > { %887 = vmatpush.bf16.msra.mxu2 %v850_v61  ;;  %906 = vmatpush.bf16.msra.mxu3 %v851_v62  ;;  %v966_v20 = vadd.f32 %v965_v63, %v2188_v27  ;;  %v985_v21 = vadd.f32 %v984_v0, %v2188_v27 }
 0x90f   : > { %1664 = vmatmul.msk.bf16.vlgmr.msra.gmra.mxu2 %vm368_vm0, %v2309_v1  ;;  %1666 = vmatmul.msk.bf16.vlgmr.msra.gmra.mxu3 %vm368_vm0, %v2309_v1 }
 0x913   : > { %v967_v2 = vpop.f32.mrf.mxu0  ;;  %v986_v3 = vpop.f32.mrf.mxu1 }
 0x914   : > { %v968_v15 = vadd.f32 %v967_v2, %v2192_v31  ;;  %v987_v16 = vadd.f32 %v986_v3, %v2192_v31 }
 0x91b   : > { %v970_v6 = vpop.f32.mrf.mxu0  ;;  %v989_v7 = vpop.f32.mrf.mxu1 }
 0x91c   : > { %v971_v11 = vadd.f32 %v970_v6, %v2190_v28  ;;  %v990_v12 = vadd.f32 %v989_v7, %v2190_v28  ;;  %v2343_v28 = vpack.c.bf16 %v968_v15, %v966_v20 }
 0x91f   : > { %1665 = vmatmul.msk.bf16.gmra.mxu2 %vm368_vm0, %v2321_v8  ;;  %1667 = vmatmul.msk.bf16.gmra.mxu3 %vm368_vm0, %v2321_v8 }
 0x923   : > { %v972_v9 = vpop.f32.mrf.mxu0  ;;  %v991_v10 = vpop.f32.mrf.mxu1 }
 0x924   : > { %v973_v13 = vadd.f32 %v972_v9, %v2194_v32  ;;  %v992_v14 = vadd.f32 %v991_v10, %v2194_v32  ;;  %v2345_v32 = vpack.c.bf16 %v987_v16, %v985_v21 }
 0x926   : > { %v2333_v18 = vpack.c.bf16 %v973_v13, %v971_v11  ;;  %v2335_v19 = vpack.c.bf16 %v992_v14, %v990_v12 }
 0x928   : > { %1004 = vmatpush.bf16.msrb.mxu2 %v2333_v18  ;;  %1017 = vmatpush.bf16.msrb.mxu3 %v2335_v19 }
 0x929   : > { %1122 = vmatpush.bf16.msrb.mxu0 %v2333_v18  ;;  %1135 = vmatpush.bf16.msrb.mxu1 %v2335_v19 }
 0x92c   : > { %1005 = vmatpush.bf16.msrb.mxu2 %v2343_v28  ;;  %1018 = vmatpush.bf16.msrb.mxu3 %v2345_v32 }
 0x92d   : > { %1123 = vmatpush.bf16.msrb.mxu0 %v2343_v28  ;;  %1136 = vmatpush.bf16.msrb.mxu1 %v2345_v32 }
 0x92f   : > { %1680 = vmatmul.msk.bf16.vlgmr.msrb.gmra.mxu2 %vm368_vm0, %v2221_v48  ;;  %1681 = vmatmul.msk.bf16.vlgmr.msrb.gmra.mxu3 %vm368_vm0, %v2221_v48 }
 0x930   : > { %1073 = vmatpush.bf16.xpose.msra.mxu2 %v2333_v18  ;;  %1086 = vmatpush.bf16.xpose.msra.mxu3 %v2335_v19 }
 0x931   : > { %1240 = vmatpush.bf16.msra.mxu0 %v2333_v18  ;;  %1253 = vmatpush.bf16.msra.mxu1 %v2335_v19 }
 0x935   : > { %1241 = vmatpush.bf16.msra.mxu0 %v2343_v28  ;;  %1254 = vmatpush.bf16.msra.mxu1 %v2345_v32 }
 0x938   : > { %1074 = vmatpush.bf16.xpose.msra.mxu2 %v2343_v28  ;;  %1087 = vmatpush.bf16.xpose.msra.mxu3 %v2345_v32 }
 0x940   : > { %1191 = vmatpush.bf16.xpose.msrb.mxu2 %v2333_v18  ;;  %1204 = vmatpush.bf16.xpose.msrb.mxu3 %v2335_v19 }
 0x948   : > { %1192 = vmatpush.bf16.xpose.msrb.mxu2 %v2343_v28  ;;  %1205 = vmatpush.bf16.xpose.msrb.mxu3 %v2345_v32 }
 0x992   : > { %v2367_v27 = vpop.f32.mrf.mxu2  ;;  %v2369_v31 = vpop.f32.mrf.mxu3 }
 0x99a   : > { %v2371_v48 = vpop.f32.mrf.mxu2  ;;  %v2373_v23 = vpop.f32.mrf.mxu3 }
 0x9a2   : > { %v2375_v29 = vpop.f32.mrf.mxu2  ;;  %v2377_v35 = vpop.f32.mrf.mxu3 }
 0x9aa   : > { %v2379_v38 = vpop.f32.mrf.mxu2  ;;  %v2381_v39 = vpop.f32.mrf.mxu3 }
 0x9b2   : > { %v1007_v41 = vpop.f32.mrf.mxu2  ;;  %v1020_v43 = vpop.f32.mrf.mxu3 }
 0x9b3   : > { %v1024_v44 = vrot.slane %v1007_v41, 4  ;;  %v1030_v45 = vrot.slane %v1020_v43, 4 }
 0x9b5   : > { %v1025_v49 = vmax.f32 %v1007_v41, %v1024_v44  ;;  %v1031_v50 = vmax.f32 %v1020_v43, %v1030_v45 }
 0x9b7   : > { %v1026_v51 = vrot.slane %v1025_v49, 2  ;;  %v1032_v40 = vrot.slane %v1031_v50, 2 }
 0x9b9   : > { %v1027_v52 = vmax.f32 %v1025_v49, %v1026_v51  ;;  %v1033_v42 = vmax.f32 %v1031_v50, %v1032_v40 }
 0x9ba   : > { %v1009_v53 = vpop.f32.mrf.mxu2  ;;  %v1022_v46 = vpop.f32.mrf.mxu3 }
 0x9bb   : > { %v1028_v47 = vrot.slane %v1027_v52, 1  ;;  %v1034_v54 = vrot.slane %v1033_v42, 1 }
 0x9bd   : > { %v1029_v55 = vmax.f32 %v1027_v52, %v1028_v47  ;;  %v1035_v17 = vmax.f32 %v1033_v42, %v1034_v54 }
 0x9bf   : > { %v1036_v56 = vsub.f32 %v1007_v41, %v1029_v55  ;;  %v1037_v57 = vsub.f32 %v1020_v43, %v1035_v17 }
 0x9c1   : > { %v1038_v58 = vmul.f32 1.442695, %v1036_v56  ;;  %v1040_v59 = vmul.f32 1.442695, %v1037_v57 }
 0x9c3   : > { %1819 = vpow2.f32 %v1038_v58 }
 0x9c4   : > { %1821 = vpow2.f32 %v1040_v59 }
 0x9c9   : > { %v1820_v22 = vpop.eup %1819 }
 0x9ca   : > { %v1822_v60 = vpop.eup %1821  ;;  %v1042_v61 = vrot.slane %v1820_v22, 4 }
 0x9cb   : > { %v1048_v62 = vrot.slane %v1822_v60, 4 }
 0x9cc   : > { %v1043_v63 = vadd.f32 %v1820_v22, %v1042_v61 }
 0x9cd   : > { %v1049_v0 = vadd.f32 %v1822_v60, %v1048_v62 }
 0x9ce   : > { %v1044_v2 = vrot.slane %v1043_v63, 2 }
 0x9cf   : > { %v1050_v3 = vrot.slane %v1049_v0, 2 }
 0x9d0   : > { %v1045_v4 = vadd.f32 %v1044_v2, %v1043_v63 }
 0x9d1   : > { %v1051_v5 = vadd.f32 %v1050_v3, %v1049_v0 }
 0x9d2   : > { %v1046_v6 = vrot.slane %v1045_v4, 1 }
 0x9d3   : > { %v1052_v7 = vrot.slane %v1051_v5, 1 }
 0x9d4   : > { %v1047_v9 = vadd.f32 %v1046_v6, %v1045_v4 }
 0x9d5   : > { %v1053_v10 = vadd.f32 %v1052_v7, %v1051_v5 }
 0x9d6   : > { %1823 = vrcp.f32 %v1047_v9 }
 0x9d7   : > { %1825 = vrcp.f32 %v1053_v10 }
 0x9dc   : > { %v1824_v11 = vpop.eup %1823 }
 0x9dd   : > { %v1826_v12 = vpop.eup %1825  ;;  %v1056_v13 = vmul.f32 %v1824_v11, %v1820_v22 }
 0x9de   : > { %v1057_v14 = vmul.f32 %v1826_v12, %v1822_v60 }
 0x9e0   : > { %v1058_v15 = vadd.f32 %v1057_v14, %v1056_v13 }
 0x9e2   : > { %1059 = vadd.xlane.f32.xlu0 %v1058_v15 }
 0xa55   : > { %v1060_v16 = vpop.xlane.xlu0 %1059 }
 0xa56   : > { %v1061_v20 = vadd.f32 1e-06, %v1060_v16 }
 0xa58   : > { %1827 = vrcp.f32 %v1061_v20 }
 0xa5e   : > { %v1828_v21 = vpop.eup %1827 }
 0xa5f   : > { %v1063_v41 = vmul.f32 %v1828_v21, %v1056_v13  ;;  %v1064_v43 = vmul.f32 %v1828_v21, %v1057_v14 }
 0xa61   : > { %v1065_v44 = vpack.c.bf16 %v1063_v41, %v1063_v41  ;;  %v1066_v45 = vpack.c.bf16 %v1064_v43, %v1064_v43 }
 0xa63   : > { %1075 = vmatmul.bf16.vlgmr.msra.gmra.mxu2 %v1065_v44  ;;  %1088 = vmatmul.bf16.vlgmr.msra.gmra.mxu3 %v1066_v45 }
 0xa64   : > { %1309 = vmatpush.bf16.xpose.msra.mxu2 %v2333_v18  ;;  %1322 = vmatpush.bf16.xpose.msra.mxu3 %v2335_v19 }
 0xa6c   : > { %1310 = vmatpush.bf16.xpose.msra.mxu2 %v2343_v28  ;;  %1323 = vmatpush.bf16.xpose.msra.mxu3 %v2345_v32 }
 0xae6   : > { %v1076_v49 = vpop.f32.mrf.mxu2  ;;  %v1089_v50 = vpop.f32.mrf.mxu3 }
 0xae7   : > { %v1090_v51 = vadd.f32 %v1089_v50, %v1076_v49 }
 0xae9   : > { %v1093_v40 = vmul.f32 %v1090_v51, %v1090_v51 }
 0xaeb   : > { %v1094_v52 = vsel %vm368_vm0, %v1093_v40, 0.0 }
 0xaec   : > { %1095 = vadd.xlane.f32.xlu1 %v1094_v52 }
 0xaee   : > { %v1078_v42 = vpop.f32.mrf.mxu2  ;;  %v1091_v53 = vpop.f32.mrf.mxu3 }
 0xb5f   : > { %v1096_v46 = vpop.xlane.xlu1 %1095 }
 0xb60   : > { %1829 = vrsqrt.f32 %v1096_v46  ;;  %vm1104_vm9 = vcmp.eq.f32.partialorder %v1096_v46, inf  ;;  %v1107_v32 = vand.u32 2147483648, %v1096_v46  ;;  %vm1106_vm10 = vcmp.eq.f32.partialorder %v1096_v46, 0.0 }
 0xb66   : > { %v1830_v47 = vpop.eup %1829 }
 0xb67   : > { %v1098_v54 = vmul.f32 %v1830_v47, %v1096_v46 }
 0xb69   : > { %v1099_v18 = vmul.f32 %v1830_v47, %v1098_v54 }
 0xb6b   : > { %v1100_v55 = vmul.f32 0.5, %v1099_v18 }
 0xb6d   : > { %v1101_v19 = vsub.f32 1.5, %v1100_v55 }
 0xb6f   : > { %v1102_v17 = vmul.f32 %v1830_v47, %v1101_v19 }
 0xb71   : > { %v1103_v28 = vmul.f32 %v1102_v17, %v1096_v46 }
 0xb73   : > { %v1105_v56 = vsel %vm1104_vm9, %v1096_v46, %v1103_v28 }
 0xb74   : > { %v1108_v57 = vsel %vm1106_vm10, %v1107_v32, %v1105_v56 }
 0xb75   : > { %v1109_v58 = vadd.f32 1e-06, %v1108_v57 }
 0xb77   : > { %1831 = vrcp.f32 %v1109_v58 }
 0xb7d   : > { %v1832_v59 = vpop.eup %1831 }
 0xb7e   : > { %v1111_v22 = vmul.f32 %v1832_v59, %v1090_v51 }
 0xb80   : > { %v1112_v60 = vpack.c.bf16 %v1111_v22, %v1111_v22 }
 0xb82   : > { %1682 = vmatmul.msk.bf16.vlgmr.msrb.gmra.mxu0 %vm368_vm0, %v1112_v60  ;;  %1683 = vmatmul.msk.bf16.vlgmr.msrb.gmra.mxu1 %vm368_vm0, %v1112_v60 }
 0xbff   : > { %v1125_v61 = vpop.f32.mrf.mxu0  ;;  %v1138_v62 = vpop.f32.mrf.mxu1 }
 0xc00   : > { %v1142_v63 = vrot.slane %v1125_v61, 4  ;;  %v1148_v0 = vrot.slane %v1138_v62, 4 }
 0xc02   : > { %v1143_v2 = vmax.f32 %v1125_v61, %v1142_v63  ;;  %v1149_v3 = vmax.f32 %v1138_v62, %v1148_v0 }
 0xc04   : > { %v1144_v4 = vrot.slane %v1143_v2, 2  ;;  %v1150_v5 = vrot.slane %v1149_v3, 2 }
 0xc06   : > { %v1145_v6 = vmax.f32 %v1143_v2, %v1144_v4  ;;  %v1151_v7 = vmax.f32 %v1149_v3, %v1150_v5 }
 0xc07   : > { %v1127_v9 = vpop.f32.mrf.mxu0  ;;  %v1140_v10 = vpop.f32.mrf.mxu1 }
 0xc08   : > { %v1146_v11 = vrot.slane %v1145_v6, 1  ;;  %v1152_v12 = vrot.slane %v1151_v7, 1 }
 0xc0a   : > { %v1147_v13 = vmax.f32 %v1145_v6, %v1146_v11  ;;  %v1153_v14 = vmax.f32 %v1151_v7, %v1152_v12 }
 0xc0c   : > { %v1154_v15 = vsub.f32 %v1125_v61, %v1147_v13  ;;  %v1155_v16 = vsub.f32 %v1138_v62, %v1153_v14 }
 0xc0e   : > { %v1156_v20 = vmul.f32 1.442695, %v1154_v15  ;;  %v1158_v21 = vmul.f32 1.442695, %v1155_v16 }
 0xc10   : > { %1833 = vpow2.f32 %v1156_v20 }
 0xc11   : > { %1835 = vpow2.f32 %v1158_v21 }
 0xc16   : > { %v1834_v41 = vpop.eup %1833 }
 0xc17   : > { %v1836_v43 = vpop.eup %1835  ;;  %v1160_v44 = vrot.slane %v1834_v41, 4 }
 0xc18   : > { %v1166_v45 = vrot.slane %v1836_v43, 4 }
 0xc19   : > { %v1161_v49 = vadd.f32 %v1834_v41, %v1160_v44 }
 0xc1a   : > { %v1167_v50 = vadd.f32 %v1836_v43, %v1166_v45 }
 0xc1b   : > { %v1162_v51 = vrot.slane %v1161_v49, 2 }
 0xc1c   : > { %v1168_v40 = vrot.slane %v1167_v50, 2 }
 0xc1d   : > { %v1163_v52 = vadd.f32 %v1162_v51, %v1161_v49 }
 0xc1e   : > { %v1169_v42 = vadd.f32 %v1168_v40, %v1167_v50 }
 0xc1f   : > { %v1164_v53 = vrot.slane %v1163_v52, 1 }
 0xc20   : > { %v1170_v46 = vrot.slane %v1169_v42, 1 }
 0xc21   : > { %v1165_v47 = vadd.f32 %v1164_v53, %v1163_v52 }
 0xc22   : > { %v1171_v54 = vadd.f32 %v1170_v46, %v1169_v42 }
 0xc23   : > { %1837 = vrcp.f32 %v1165_v47 }
 0xc24   : > { %1839 = vrcp.f32 %v1171_v54 }
 0xc29   : > { %v1838_v18 = vpop.eup %1837 }
 0xc2a   : > { %v1840_v55 = vpop.eup %1839  ;;  %v1174_v19 = vmul.f32 %v1838_v18, %v1834_v41 }
 0xc2b   : > { %v1175_v17 = vmul.f32 %v1840_v55, %v1836_v43 }
 0xc2d   : > { %v1176_v28 = vadd.f32 %v1175_v17, %v1174_v19 }
 0xc2f   : > { %1177 = vadd.xlane.f32.xlu0 %v1176_v28 }
 0xca2   : > { %v1178_v32 = vpop.xlane.xlu0 %1177 }
 0xca3   : > { %v1179_v56 = vadd.f32 1e-06, %v1178_v32 }
 0xca5   : > { %1841 = vrcp.f32 %v1179_v56 }
 0xcab   : > { %v1842_v57 = vpop.eup %1841 }
 0xcac   : > { %v1181_v58 = vmul.f32 %v1842_v57, %v1174_v19  ;;  %v1182_v59 = vmul.f32 %v1842_v57, %v1175_v17 }
 0xcae   : > { %v1183_v22 = vpack.c.bf16 %v1181_v58, %v1181_v58  ;;  %v1184_v60 = vpack.c.bf16 %v1182_v59, %v1182_v59 }
 0xcb0   : > { %1193 = vmatmul.bf16.vlgmr.msrb.gmra.mxu2 %v1183_v22  ;;  %1206 = vmatmul.bf16.vlgmr.msrb.gmra.mxu3 %v1184_v60 }
 0xd33   : > { %v1194_v61 = vpop.f32.mrf.mxu2  ;;  %v1207_v62 = vpop.f32.mrf.mxu3 }
 0xd34   : > { %v1208_v63 = vadd.f32 %v1207_v62, %v1194_v61 }
 0xd36   : > { %v1211_v0 = vmul.f32 %v1208_v63, %v1208_v63 }
 0xd38   : > { %v1212_v2 = vsel %vm368_vm0, %v1211_v0, 0.0 }
 0xd39   : > { %1213 = vadd.xlane.f32.xlu1 %v1212_v2 }
 0xd3b   : > { %v1196_v3 = vpop.f32.mrf.mxu2  ;;  %v1209_v4 = vpop.f32.mrf.mxu3 }
 0xdac   : > { %v1214_v5 = vpop.xlane.xlu1 %1213 }
 0xdad   : > { %1843 = vrsqrt.f32 %v1214_v5  ;;  %vm1222_vm11 = vcmp.eq.f32.partialorder %v1214_v5, inf  ;;  %v1225_v14 = vand.u32 2147483648, %v1214_v5  ;;  %vm1224_vm12 = vcmp.eq.f32.partialorder %v1214_v5, 0.0 }
 0xdb3   : > { %v1844_v6 = vpop.eup %1843 }
 0xdb4   : > { %v1216_v7 = vmul.f32 %v1844_v6, %v1214_v5 }
 0xdb6   : > { %v1217_v9 = vmul.f32 %v1844_v6, %v1216_v7 }
 0xdb8   : > { %v1218_v10 = vmul.f32 0.5, %v1217_v9 }
 0xdba   : > { %v1219_v11 = vsub.f32 1.5, %v1218_v10 }
 0xdbc   : > { %v1220_v12 = vmul.f32 %v1844_v6, %v1219_v11 }
 0xdbe   : > { %v1221_v13 = vmul.f32 %v1220_v12, %v1214_v5 }
 0xdc0   : > { %v1223_v15 = vsel %vm1222_vm11, %v1214_v5, %v1221_v13 }
 0xdc1   : > { %v1226_v16 = vsel %vm1224_vm12, %v1225_v14, %v1223_v15 }
 0xdc2   : > { %v1227_v20 = vadd.f32 1e-06, %v1226_v16 }
 0xdc4   : > { %1845 = vrcp.f32 %v1227_v20 }
 0xdca   : > { %v1846_v21 = vpop.eup %1845 }
 0xdcb   : > { %v1229_v41 = vmul.f32 %v1846_v21, %v1208_v63 }
 0xdcd   : > { %v1230_v43 = vpack.c.bf16 %v1229_v41, %v1229_v41 }
 0xdcf   : > { %1684 = vmatmul.msk.bf16.vlgmr.msra.gmra.mxu0 %vm368_vm0, %v1230_v43  ;;  %1685 = vmatmul.msk.bf16.vlgmr.msra.gmra.mxu1 %vm368_vm0, %v1230_v43 }
 0xe4c   : > { %v1243_v44 = vpop.f32.mrf.mxu0  ;;  %v1256_v45 = vpop.f32.mrf.mxu1 }
 0xe4d   : > { %v1260_v49 = vrot.slane %v1243_v44, 4  ;;  %v1266_v50 = vrot.slane %v1256_v45, 4 }
 0xe4f   : > { %v1261_v51 = vmax.f32 %v1243_v44, %v1260_v49  ;;  %v1267_v40 = vmax.f32 %v1256_v45, %v1266_v50 }
 0xe51   : > { %v1262_v52 = vrot.slane %v1261_v51, 2  ;;  %v1268_v42 = vrot.slane %v1267_v40, 2 }
 0xe53   : > { %v1263_v53 = vmax.f32 %v1261_v51, %v1262_v52  ;;  %v1269_v46 = vmax.f32 %v1267_v40, %v1268_v42 }
 0xe54   : > { %v1245_v47 = vpop.f32.mrf.mxu0  ;;  %v1258_v54 = vpop.f32.mrf.mxu1 }
 0xe55   : > { %v1264_v18 = vrot.slane %v1263_v53, 1  ;;  %v1270_v55 = vrot.slane %v1269_v46, 1  ;;  %v331_v54 = vld [vmem:[%s2545_s5] sm:$0xff] }
 0xe57   : > { %v1265_v19 = vmax.f32 %v1263_v53, %v1264_v18  ;;  %v1271_v17 = vmax.f32 %v1269_v46, %v1270_v55  ;;  %v332_v18 = vld [vmem:[%s2545_s5 + $0x8] sm:$0xff]  ;;  %v333_v55 = vld [vmem:[%s2545_s5 + $0x10] sm:$0xff] }
 0xe59   : > { %v1272_v28 = vsub.f32 %v1243_v44, %v1265_v19  ;;  %v1273_v32 = vsub.f32 %v1256_v45, %v1271_v17  ;;  %v334_v19 = vld [vmem:[%s2545_s5 + $0x18] sm:$0xff] }
 0xe5b   : > { %v1274_v56 = vmul.f32 1.442695, %v1272_v28  ;;  %v1276_v57 = vmul.f32 1.442695, %v1273_v32 }
 0xe5d   : > { %1847 = vpow2.f32 %v1274_v56 }
 0xe5e   : > { %1849 = vpow2.f32 %v1276_v57 }
 0xe63   : > { %v1848_v58 = vpop.eup %1847 }
 0xe64   : > { %v1850_v59 = vpop.eup %1849  ;;  %v1278_v22 = vrot.slane %v1848_v58, 4 }
 0xe65   : > { %v1284_v60 = vrot.slane %v1850_v59, 4 }
 0xe66   : > { %v1279_v61 = vadd.f32 %v1848_v58, %v1278_v22 }
 0xe67   : > { %v1285_v62 = vadd.f32 %v1850_v59, %v1284_v60 }
 0xe68   : > { %v1280_v63 = vrot.slane %v1279_v61, 2 }
 0xe69   : > { %v1286_v0 = vrot.slane %v1285_v62, 2 }
 0xe6a   : > { %v1281_v2 = vadd.f32 %v1280_v63, %v1279_v61 }
 0xe6b   : > { %v1287_v3 = vadd.f32 %v1286_v0, %v1285_v62 }
 0xe6c   : > { %v1282_v4 = vrot.slane %v1281_v2, 1 }
 0xe6d   : > { %v1288_v5 = vrot.slane %v1287_v3, 1 }
 0xe6e   : > { %v1283_v6 = vadd.f32 %v1282_v4, %v1281_v2 }
 0xe6f   : > { %v1289_v7 = vadd.f32 %v1288_v5, %v1287_v3  ;;  %v1861_v3 = vld [vmem:[%s2138_s16] sm:$0xff]  ;;  %v1862_v5 = vld [vmem:[%s2138_s16 + $0x8] sm:$0xff] }
 0xe70   : > { %1851 = vrcp.f32 %v1283_v6 }
 0xe71   : > { %1853 = vrcp.f32 %v1289_v7 }
 0xe76   : > { %v1852_v9 = vpop.eup %1851 }
 0xe77   : > { %v1854_v10 = vpop.eup %1853  ;;  %v1292_v11 = vmul.f32 %v1852_v9, %v1848_v58 }
 0xe78   : > { %v1293_v12 = vmul.f32 %v1854_v10, %v1850_v59 }
 0xe79   : > { %v1349_v13 = vpack.c.bf16 %v1292_v11, %v1292_v11 }
 0xe7a   : > { %v1294_v14 = vadd.f32 %v1293_v12, %v1292_v11  ;;  %v1350_v15 = vpack.c.bf16 %v1293_v12, %v1293_v12 }
 0xe7b   : > { %v1374_v16 = vsel %vm797_vm5, %v1349_v13, 0  ;;  %v1863_v13 = vld [vmem:[%s2138_s16 + $0x10] sm:$0xff] }
 0xe7c   : > { %1295 = vadd.xlane.f32.xlu2 %v1294_v14  ;;  %1386 = vmatpush.bf16.msrb.mxu0 %v1374_v16  ;;  %v1377_v20 = vsel %vm797_vm5, %v1350_v15, 0  ;;  %v1864_v15 = vld [vmem:[%s2138_s16 + $0x18] sm:$0xff] }
 0xe7d   : > { %1405 = vmatpush.bf16.msrb.mxu1 %v1377_v20 }
 0xeef   : > { %v1296_v21 = vpop.xlane.xlu2 %1295 }
 0xef0   : > { %v1297_v41 = vadd.f32 1e-06, %v1296_v21 }
 0xef2   : > { %1855 = vrcp.f32 %v1297_v41 }
 0xef8   : > { %v1856_v43 = vpop.eup %1855 }
 0xef9   : > { %v1299_v44 = vmul.f32 %v1856_v43, %v1292_v11  ;;  %v1300_v45 = vmul.f32 %v1856_v43, %v1293_v12 }
 0xefb   : > { %v1301_v49 = vpack.c.bf16 %v1299_v44, %v1299_v44  ;;  %v1302_v50 = vpack.c.bf16 %v1300_v45, %v1300_v45  ;;  %v1865_v45 = vld [vmem:[%s2138_s16 + $0x20] sm:$0xff] }
 0xefd   : > { %1311 = vmatmul.bf16.vlgmr.msra.gmra.mxu2 %v1301_v49  ;;  %1324 = vmatmul.bf16.vlgmr.msra.gmra.mxu3 %v1302_v50  ;;  %v1866_v50 = vld [vmem:[%s2138_s16 + $0x28] sm:$0xff] }
 0xf80   : > { %v1312_v51 = vpop.f32.mrf.mxu2  ;;  %v1325_v40 = vpop.f32.mrf.mxu3 }
 0xf81   : > { %v1326_v52 = vadd.f32 %v1325_v40, %v1312_v51 }
 0xf83   : > { %v1329_v42 = vmul.f32 %v1326_v52, %v1326_v52 }
 0xf85   : > { %v1330_v53 = vsel %vm368_vm0, %v1329_v42, 0.0 }
 0xf86   : > { %1331 = vadd.xlane.f32.xlu0 %v1330_v53 }
 0xf88   : > { %v1314_v46 = vpop.f32.mrf.mxu2  ;;  %v1327_v47 = vpop.f32.mrf.mxu3 }
 0xf89   : > { %v1867_v46 = vld [vmem:[%s2138_s16 + $0x30] sm:$0xff]  ;;  %v1868_v47 = vld [vmem:[%s2138_s16 + $0x38] sm:$0xff] }
 0xf9a   : > { %856 = vperm.xlu0 %1775, %v331_v54  }
 0xfa2   : > { %861 = vperm.xlu0 %1775, %v332_v18  }
 0xfaa   : > { %866 = vperm.xlu0 %1775, %v333_v55  }
 0xfb2   : > { %871 = vperm.xlu0 %1775, %v334_v19  }
 0xff9   : > { %v1332_v17 = vpop.xlane.xlu0 %1331 }
 0xffa   : > { %1857 = vrsqrt.f32 %v1332_v17  ;;  %vm1340_vm13 = vcmp.eq.f32.partialorder %v1332_v17, inf  ;;  %v1343_v60 = vand.u32 2147483648, %v1332_v17  ;;  %vm1342_vm14 = vcmp.eq.f32.partialorder %v1332_v17, 0.0 }
0x1000   : > { %v1858_v28 = vpop.eup %1857 }
0x1001   : > { %v1334_v32 = vmul.f32 %v1858_v28, %v1332_v17 }
0x1003   : > { %v1335_v56 = vmul.f32 %v1858_v28, %v1334_v32 }
0x1005   : > { %v1336_v57 = vmul.f32 0.5, %v1335_v56 }
0x1007   : > { %v1337_v58 = vsub.f32 1.5, %v1336_v57 }
0x1009   : > { %v1338_v59 = vmul.f32 %v1858_v28, %v1337_v58 }
0x100b   : > { %v1339_v22 = vmul.f32 %v1338_v59, %v1332_v17 }
0x100c   : > { %v2408_v61 = vpop.permute.xlu0 %856 }
0x100d   : > { %v1341_v62 = vsel %vm1340_vm13, %v1332_v17, %v1339_v22  ;;  %v890_v63 = vadd.f32 %v2367_v27, %v2408_v61  ;;  %v909_v0 = vadd.f32 %v2369_v31, %v2408_v61 }
0x100e   : > { %v1344_v2 = vsel %vm1342_vm14, %v1343_v60, %v1341_v62 }
0x100f   : > { %v918_v4 = vadd.f32 %v1861_v3, %v890_v63  ;;  %v919_v6 = vadd.f32 %v1862_v5, %v909_v0  ;;  %v1345_v7 = vadd.f32 1e-06, %v1344_v2 }
0x1011   : > { %v926_v9 = vmax.f32 %v918_v4, 0.0  ;;  %v927_v10 = vmax.f32 %v919_v6, 0.0  ;;  %1859 = vrcp.f32 %v1345_v7 }
0x1013   : > { %934 = vst [vmem:[%s2418_s21] sm:$0xff] %v926_v9 }
0x1014   : > { %935 = vst [vmem:[%s2418_s21 + $0x8] sm:$0xff] %v927_v10  ;;  %v2422_v27 = vpop.permute.xlu0 %861 }
0x1015   : > { %v892_v31 = vadd.f32 %v2371_v48, %v2422_v27  ;;  %v911_v11 = vadd.f32 %v2373_v23, %v2422_v27 }
0x1017   : > { %v1860_v12 = vpop.eup %1859  ;;  %v920_v14 = vadd.f32 %v1863_v13, %v892_v31  ;;  %v921_v16 = vadd.f32 %v1864_v15, %v911_v11 }
0x1018   : > { %v1347_v20 = vmul.f32 %v1860_v12, %v1326_v52 }
0x1019   : > { %v928_v21 = vmax.f32 %v920_v14, 0.0  ;;  %v929_v41 = vmax.f32 %v921_v16, 0.0 }
0x101a   : > { %v1348_v43 = vpack.c.bf16 %v1347_v20, %v1347_v20  ;;  %1702 = vst.msk [vmem:[%s2255_s18 + $0x8] sm:$0xff] %vm368_vm0, %v1347_v20 }
0x101b   : > { %936 = vst [vmem:[%s2418_s21 + $0x10] sm:$0xff] %v928_v21 }
0x101c   : > { %937 = vst [vmem:[%s2418_s21 + $0x18] sm:$0xff] %v929_v41  ;;  %1351 = vxpose.xlu1.c.b16.start.end [1/1] (short) (narrow) %v1348_v43, 32  ;;  %v2434_v48 = vpop.permute.xlu0 %866 }
0x101d   : > { %v895_v23 = vadd.f32 %v2375_v29, %v2434_v48  ;;  %v914_v44 = vadd.f32 %v2377_v35, %v2434_v48 }
0x101f   : > { %v922_v49 = vadd.f32 %v1865_v45, %v895_v23  ;;  %v923_v51 = vadd.f32 %v1866_v50, %v914_v44 }
0x1021   : > { %v930_v40 = vmax.f32 %v922_v49, 0.0  ;;  %v931_v52 = vmax.f32 %v923_v51, 0.0 }
0x1023   : > { %938 = vst [vmem:[%s2418_s21 + $0x20] sm:$0xff] %v930_v40 }
0x1024   : > { %939 = vst [vmem:[%s2418_s21 + $0x28] sm:$0xff] %v931_v52  ;;  %v2444_v42 = vpop.permute.xlu0 %871 }
0x1025   : > { %v897_v53 = vadd.f32 %v2379_v38, %v2444_v42  ;;  %v916_v29 = vadd.f32 %v2381_v39, %v2444_v42 }
0x1027   : > { %v924_v35 = vadd.f32 %v1867_v46, %v897_v53  ;;  %v925_v54 = vadd.f32 %v1868_v47, %v916_v29 }
0x1029   : > { %v932_v18 = vmax.f32 %v924_v35, 0.0  ;;  %v933_v55 = vmax.f32 %v925_v54, 0.0 }
0x102b   : > { %940 = vst [vmem:[%s2418_s21 + $0x30] sm:$0xff] %v932_v18 }
0x102c   : > { %941 = vst [vmem:[%s2418_s21 + $0x38] sm:$0xff] %v933_v55 }
0x10c8   : > { %v1359_v19 = vpop.trf.xlu1 }
0x10c9   : > { %1686 = vmatmul.msk.bf16.vlgmr.msrb.gmra.mxu0 %vm790_vm8, %v1359_v19  ;;  %1688 = vmatmul.msk.bf16.vlgmr.msrb.gmra.mxu1 %vm790_vm8, %v1359_v19 }
0x10d8   : > { %v1360_v17 = vpop.trf.xlu1 }
0x10d9   : > { %1687 = vmatmul.msk.bf16.gmra.mxu0 %vm790_vm8, %v1360_v17  ;;  %1689 = vmatmul.msk.bf16.gmra.mxu1 %vm790_vm8, %v1360_v17 }
0x1146   : > { %v1388_v38 = vpop.f32.mrf.mxu0  ;;  %v1407_v39 = vpop.f32.mrf.mxu1 }
0x1147   : > { %v1417_v5 = vmax.f32 %v1388_v38, 0.0  ;;  %v1418_v6 = vmax.f32 %v1407_v39, 0.0 }
0x114e   : > { %v1390_v28 = vpop.f32.mrf.mxu0  ;;  %v1409_v32 = vpop.f32.mrf.mxu1 }
0x114f   : > { %v1419_v0 = vmax.f32 %v1390_v28, 0.0  ;;  %v1420_v2 = vmax.f32 %v1409_v32, 0.0 }
0x1151   : > { %v1425_v7 = vpack.c.bf16 %v1419_v0, %v1417_v5  ;;  %v1426_v9 = vpack.c.bf16 %v1420_v2, %v1418_v6 }
0x1156   : > { %v1393_v56 = vpop.f32.mrf.mxu0  ;;  %v1412_v57 = vpop.f32.mrf.mxu1 }
0x1157   : > { %v1421_v22 = vmax.f32 %v1393_v56, 0.0  ;;  %v1422_v60 = vmax.f32 %v1412_v57, 0.0 }
0x115e   : > { %v1395_v58 = vpop.f32.mrf.mxu0  ;;  %v1414_v59 = vpop.f32.mrf.mxu1 }
0x115f   : > { %v1423_v62 = vmax.f32 %v1395_v58, 0.0  ;;  %v1424_v63 = vmax.f32 %v1414_v59, 0.0 }
0x1161   : > { %v1427_v3 = vpack.c.bf16 %v1423_v62, %v1421_v22  ;;  %v1428_v4 = vpack.c.bf16 %v1424_v63, %v1422_v60 }
0x1163   : > { %1435 = vmatpush.bf16.msrb.mxu2 %v1427_v3  ;;  %1454 = vmatpush.bf16.msrb.mxu3 %v1428_v4 }
0x1167   : > { %1436 = vmatpush.bf16.msrb.mxu2 %v1425_v7  ;;  %1455 = vmatpush.bf16.msrb.mxu3 %v1426_v9 }
0x116a   : > { %1690 = vmatmul.msk.bf16.vlgmr.msrb.gmra.mxu2 %vm368_vm0, %v2309_v1  ;;  %1692 = vmatmul.msk.bf16.vlgmr.msrb.gmra.mxu3 %vm368_vm0, %v2309_v1 }
0x117a   : > { %1691 = vmatmul.msk.bf16.gmra.mxu2 %vm368_vm0, %v2321_v8  ;;  %1693 = vmatmul.msk.bf16.gmra.mxu3 %vm368_vm0, %v2321_v8 }
0x117b   : > { %1926 = shalt.err (!%p1923_p4)
}
0x117c   : > { %s2002_s18 = smov 128   ;;  %s2003_s10 = smov 8  }
0x117d   : > { %1720 = dma.vmem_to_hbm [thread:$0]  (%p2096_p11), %s1531_s8, 256, %s1533_s17, %s1500_s11, %s2002_s18, %s2002_s18, %s2003_s10  }
0x117e   : > { %s1715_s0 = sshll.u32 %s2067_s28, 7  ;;  %s1513_s29 = sshll.u32 %s2418_s21, 4  ;;  %s1514_s29 = int_to_ptr.vmem [resolvable:$true] %s1513_s29 }
0x117f   : > { %s1512_s23 = scalar_lea.hbm %s2546_s6, %s1715_s0  ;;  %s1495_s8 = scalar_lea.sflag [#allocation4], %s2132_s22 }
0x1180   : > { %s1515_s28 = sshll.u32 %s1512_s23, 4  ;;  %s1947_s20 = scalar_lea.hbm %s2546_s6, 256  ;;  %s1516_s28 = int_to_ptr.hbm [resolvable:$true] %s1515_s28 }
0x1181   : > { %s1941_s17 = sshra.s32 %s1516_s28, 4  ;;  %s1942_s17 = int_to_ptr.hbm [resolvable:$true] %s1941_s17 }
0x1182   : > { %s1943_s11 = scalar_lea.hbm %s1942_s17, 128  ;;  %p1948_p10 = scmp.lt.s32.totalorder %s1942_s17, %s2546_s6 }
0x1183   : > { %p1944_p7 = scmp.ne.s32.totalorder %s1942_s17, %s1943_s11  ;;  %p1949_p2 = scmp.lt.s32.totalorder %s1947_s20, %s1943_s11 }
0x1185   : > { %p1945_p5 = pnand %p1944_p7, %p2096_p11  ;;  %p1950_p6 = por %p1949_p2, %p1948_p10 }
0x1187   : > { %p1946_p8 = pneg %p1945_p5 }
0x1189   : > { %p1951_p9 = pnand %p1950_p6, %p1946_p8 }
0x11ed   : > { %v1438_v1 = vpop.f32.mrf.mxu2  ;;  %v1457_v8 = vpop.f32.mrf.mxu3 }
0x11ee   : > { %v1439_v10 = vadd.f32 %v1438_v1, %v2408_v61  ;;  %v1458_v31 = vadd.f32 %v1457_v8, %v2408_v61 }
0x11f0   : > { %v1467_v11 = vadd.f32 %v2274_v33, %v1439_v10  ;;  %v1468_v12 = vadd.f32 %v2282_v36, %v1458_v31 }
0x11f2   : > { %v1475_v13 = vmax.f32 %v1467_v11, 0.0  ;;  %v1476_v14 = vmax.f32 %v1468_v12, 0.0 }
0x11f4   : > { %1694 = vst [vmem:[%s2418_s21 + $0x40] sm:$0xff] %v1475_v13 }
0x11f5   : > { %1695 = vst [vmem:[%s2418_s21 + $0x48] sm:$0xff] %v1476_v14  ;;  %v1440_v15 = vpop.f32.mrf.mxu2  ;;  %v1459_v16 = vpop.f32.mrf.mxu3 }
0x11f6   : > { %v1441_v20 = vadd.f32 %v1440_v15, %v2422_v27  ;;  %v1460_v21 = vadd.f32 %v1459_v16, %v2422_v27 }
0x11f8   : > { %v1469_v41 = vadd.f32 %v2277_v34, %v1441_v20  ;;  %v1470_v61 = vadd.f32 %v2285_v37, %v1460_v21 }
0x11fa   : > { %v1477_v33 = vmax.f32 %v1469_v41, 0.0  ;;  %v1478_v43 = vmax.f32 %v1470_v61, 0.0 }
0x11fc   : > { %1696 = vst [vmem:[%s2418_s21 + $0x50] sm:$0xff] %v1477_v33 }
0x11fd   : > { %1697 = vst [vmem:[%s2418_s21 + $0x58] sm:$0xff] %v1478_v43  ;;  %v1443_v36 = vpop.f32.mrf.mxu2  ;;  %v1462_v23 = vpop.f32.mrf.mxu3 }
0x11fe   : > { %v1444_v44 = vadd.f32 %v1443_v36, %v2434_v48  ;;  %v1463_v45 = vadd.f32 %v1462_v23, %v2434_v48 }
0x1200   : > { %v1471_v49 = vadd.f32 %v2260_v24, %v1444_v44  ;;  %v1472_v27 = vadd.f32 %v2266_v26, %v1463_v45 }
0x1202   : > { %v1479_v34 = vmax.f32 %v1471_v49, 0.0  ;;  %v1480_v50 = vmax.f32 %v1472_v27, 0.0 }
0x1204   : > { %1698 = vst [vmem:[%s2418_s21 + $0x60] sm:$0xff] %v1479_v34 }
0x1205   : > { %1699 = vst [vmem:[%s2418_s21 + $0x68] sm:$0xff] %v1480_v50  ;;  %v1445_v37 = vpop.f32.mrf.mxu2  ;;  %v1464_v51 = vpop.f32.mrf.mxu3 }
0x1206   : > { %v1446_v48 = vadd.f32 %v1445_v37, %v2444_v42  ;;  %v1465_v24 = vadd.f32 %v1464_v51, %v2444_v42 }
0x1208   : > { %v1473_v26 = vadd.f32 %v2263_v25, %v1446_v48  ;;  %v1474_v40 = vadd.f32 %v2271_v30, %v1465_v24 }
0x120a   : > { %v1481_v52 = vmax.f32 %v1473_v26, 0.0  ;;  %v1482_v53 = vmax.f32 %v1474_v40, 0.0 }
0x120c   : > { %1700 = vst [vmem:[%s2418_s21 + $0x70] sm:$0xff] %v1481_v52 }
0x120d   : > { %1701 = vst [vmem:[%s2418_s21 + $0x78] sm:$0xff] %v1482_v53 }
0x120e   : > { %1954 = shalt.err (!%p1951_p9)
}
0x120f   : > { %s2004_s22 = smov 256   ;;  %s2005_s21 = smov 16  }
0x1210   : > { %1719 = dma.vmem_to_hbm [thread:$0]  (%p2096_p11), %s1514_s29, 2048, %s1516_s28, %s1495_s8, %s2004_s22, %s2004_s22, %s2005_s21  }
0x1211 PF: > { %s1547_s18 = sand.u32 1, %s1985_s24   ;;  %p2558_p13 = scmp.ge.s32.totalorder %s1997_s27, 2 }
0x1212   : > { %s1548_s10 = scalar_lea.sflag [#allocation4], %s1547_s18 }
0x1213   : > { %p1728_p0 = pnand %p2558_p13, %p2100_p12 }
0x1215   : > { %p1729_p1 = pneg %p1728_p0 }
0x1217   : > { %1976 = dma.done.wait (%p1729_p1), %s1548_s10, 2048  }
0x1218   : > { %1978 = vsyncadd (%p1729_p1), %s1548_s10, 4294965248  ;;  %s1558_s0 = scalar_lea.sflag [#allocation7], %s1547_s18 }
0x1219   : > { %1980 = dma.done.wait (%p1729_p1), %s1558_s0, 256  }
0x121a   : > { %1982 = vsyncadd (%p1729_p1), %s1558_s0, 4294967040  ;;  %s2559_s13 = sld [smem:[#allocation11_spill]]  ;;  %p24_p11 = scmp.ge.s32.totalorder %s2071_s30, 4  }
0x121b   : > { %s2560_s24 = smov %s1989_s25  ;;  %s2561_s25 = smov %s1993_s26 }
0x121c   : > { %s2563_s27 = smov %s2071_s30  ;;  %26 = sbr.rel (!%p24_p11) target bundleno = 10 (0xa), region = 109 }
0x1220   : > { %s2562_s26 = smov %s2559_s13 }
0x1221   :  { %1564 = vsyncpa [#allocation3], 1 }
0x1222   :  { %1566 = vsyncpa [#allocation3 + $0x1], 1 }
0x1223   :  { %1567 = vsyncpa [#allocation4], 1 }
0x1224   :  { %1569 = vsyncpa [#allocation4 + $0x1], 1 }
0x1225   :  { %1570 = vsyncpa [#allocation7], 1 }
0x1226   :  { %1572 = vsyncpa [#allocation7 + $0x1], 1 }

</bundles_post_ra>
